<compile_context>
chip_gen: v6e
topology: v6e:2x2x1
jax: 0.10.0
libtpu: 0.0.40
codegen_flags: <defaults>
</compile_context>

<pallas_src>
import math
import jax
import jax.numpy as jnp
from jax import lax
from jax.experimental import pallas as pl
from jax.experimental.pallas import tpu as pltpu

# ----------------------------- config (synthetic) ----------------------------
CFG = {
    "features": ["x", "y", "z", "vx", "vy", "vz"],          # in_feats = 6
    "targets": ["x", "y", "z"],                             # out_feats = 3
    "sequence_length_in": 8,
    "sequence_length_out": 4,
    "lstm_units": (32, 32),
    "dense_units_after_recurrent": [32],                    # single dense layer
    "dropout_rate": 0.1,                                    # eval mode -> identity
}

IN_FEATS = len(CFG["features"])
OUT_FEATS = len(CFG["targets"])
SEQ_IN = CFG["sequence_length_in"]
SEQ_OUT = CFG["sequence_length_out"]
U1, U2 = CFG["lstm_units"]
DENSE_UNITS = CFG["dense_units_after_recurrent"]


# ------------------------------- fused kernel --------------------------------
def _make_fused_kernel(T, H1, H2):
    """Fused LSTM1 -> LSTM2 -> MLP-head kernel (wavefront-interleaved recurrences).

    Ref layout (per grid block, all VMEM-resident):
      x_ref:    (T, TB, F)     time-major input block
      wih1_ref: (F, 4H1) f32   whh1_ref: (H1, 4H1) bf16   b1_ref: (1, 4H1)  # b_ih+b_hh
      wih2_ref: (H1, 4H2) bf16 whh2_ref: (H2, 4H2) bf16   b2_ref: (1, 4H2)
      d1w_ref:  (H2, D1)       d1b_ref:  (1, D1)
      ow_ref:   (D1, O)        ob_ref:   (1, O)
      out_ref:  (TB, O)
    """

    def lstm_cell(gates, c_prev, H, first):
        # gates: (TB, 4H) f32, PyTorch gate order (i, f, g, o).
        sg = jax.nn.sigmoid(gates)                 # one full-width EUP push; i/f/o sliced
        g = jnp.tanh(gates[:, 2 * H:3 * H])
        if first:                                  # peeled first step: h = c = 0
            c = sg[:, 0:H] * g
        else:
            c = sg[:, H:2 * H] * c_prev + sg[:, 0:H] * g
        h = sg[:, 3 * H:4 * H] * jnp.tanh(c)
        return h, c

    def kernel(x_ref, wih1_ref, whh1_ref, b1_ref,
               wih2_ref, whh2_ref, b2_ref,
               d1w_ref, d1b_ref, ow_ref, ob_ref, out_ref):
        f32, bf16 = jnp.float32, jnp.bfloat16

        wih1, whh1, b1 = wih1_ref[...], whh1_ref[...], b1_ref[...]
        wih2, whh2, b2 = wih2_ref[...], whh2_ref[...], b2_ref[...]

        h1 = c1 = h2 = c2 = None
        # Wavefront: wave w = (layer-1 step w) + (layer-2 step w-1); fully unrolled
        # (T is a static 8) so the two independent chains overlap within each wave.
        # TODO(synk): if a bundle dump shows the VALU slot binding, realign the 32-lane
        # gate slices with pltpu.roll so the shifts ride the XLU slot instead.
        for w in range(T + 1):
            nh1, nc1 = h1, c1
            if w < T:                                        # ---- layer-1 step w
                g1 = jnp.dot(x_ref[w], wih1, preferred_element_type=f32) + b1
                if w > 0:                                    # peel: h1 == 0 at w == 0
                    g1 = g1 + jnp.dot(h1.astype(bf16), whh1,
                                      preferred_element_type=f32)
                nh1, nc1 = lstm_cell(g1, c1, H1, first=(w == 0))
            if w >= 1:                                       # ---- layer-2 step w-1
                g2 = jnp.dot(h1.astype(bf16), wih2,          # uses h1_{w-1}
                             preferred_element_type=f32) + b2
                if w > 1:                                    # peel: h2 == 0 at first step
                    g2 = g2 + jnp.dot(h2.astype(bf16), whh2,
                                      preferred_element_type=f32)
                h2, c2 = lstm_cell(g2, c2, H2, first=(w == 1))
            h1, c1 = nh1, nc1

        # ---- MLP head: Dropout(eval)=identity -> Linear -> ReLU -> Dropout -> Linear
        z = jnp.dot(h2, d1w_ref[...], preferred_element_type=f32) + d1b_ref[...]
        z = jnp.maximum(z, 0.0)                              # ReLU
        out_ref[...] = (jnp.dot(z, ow_ref[...], preferred_element_type=f32)
                        + ob_ref[...])

    return kernel


# ------------------------------ parameter handling -----------------------------
def _uniform(key, shape, bound):
    return jax.random.uniform(key, shape, jnp.float32, -bound, bound)


def init_params(key):
    """PyTorch-layout parameters (W_ih: (4H, in), W_hh: (4H, H), Linear as (in, out))."""
    p = {}
    keys = jax.random.split(key, 16)
    ki = iter(range(16))

    k = 1.0 / math.sqrt(U1)
    p["l1_w_ih"] = _uniform(keys[next(ki)], (4 * U1, IN_FEATS), k)
    p["l1_w_hh"] = _uniform(keys[next(ki)], (4 * U1, U1), k)
    p["l1_b_ih"] = _uniform(keys[next(ki)], (4 * U1,), k)
    p["l1_b_hh"] = _uniform(keys[next(ki)], (4 * U1,), k)

    k = 1.0 / math.sqrt(U2)
    p["l2_w_ih"] = _uniform(keys[next(ki)], (4 * U2, U1), k)
    p["l2_w_hh"] = _uniform(keys[next(ki)], (4 * U2, U2), k)
    p["l2_b_ih"] = _uniform(keys[next(ki)], (4 * U2,), k)
    p["l2_b_hh"] = _uniform(keys[next(ki)], (4 * U2,), k)

    d1 = DENSE_UNITS[0]
    k = 1.0 / math.sqrt(U2)
    p["d1_w"] = _uniform(keys[next(ki)], (U2, d1), k)
    p["d1_b"] = _uniform(keys[next(ki)], (d1,), k)

    k = 1.0 / math.sqrt(d1)
    p["out_w"] = _uniform(keys[next(ki)], (d1, SEQ_OUT * OUT_FEATS), k)
    p["out_b"] = _uniform(keys[next(ki)], (SEQ_OUT * OUT_FEATS,), k)
    return p


def prepare_params(p):
    """One-time preprocessing: transpose LSTM weights, fold biases, cast the weights
    that sit on the serial recurrent chain to bf16 (dots still accumulate in f32)."""
    bf16 = jnp.bfloat16
    return {
        "wih1": jnp.transpose(p["l1_w_ih"]),                         # (F, 4H1)  f32
        "whh1": jnp.transpose(p["l1_w_hh"]).astype(bf16),            # (H1, 4H1) bf16
        "b1": (p["l1_b_ih"] + p["l1_b_hh"]).reshape(1, 4 * U1),
        "wih2": jnp.transpose(p["l2_w_ih"]).astype(bf16),            # (H1, 4H2) bf16
        "whh2": jnp.transpose(p["l2_w_hh"]).astype(bf16),            # (H2, 4H2) bf16
        "b2": (p["l2_b_ih"] + p["l2_b_hh"]).reshape(1, 4 * U2),
        "d1w": p["d1_w"],                                            # (H2, D1)  f32
        "d1b": p["d1_b"].reshape(1, -1),
        "ow": p["out_w"],                                            # (D1, O)   f32
        "ob": p["out_b"].reshape(1, -1),
    }


# --------------------------------- forward ------------------------------------
@jax.jit
def lstm_predictor_forward(pp, x):
    """x: (B, T, IN_FEATS) float32, batch-first (PyTorch convention)."""
    B, T, F = x.shape
    H1 = pp["whh1"].shape[0]
    H2 = pp["whh2"].shape[0]
    O = pp["ow"].shape[1]

    # Batch tile: single block for small batches; 256-row parallel blocks otherwise so
    # per-block VMEM stays bounded and v7x's two TensorCores split the grid.
    TB = B if B <= 256 else 256
    Bp = pl.cdiv(B, TB) * TB

    x_tm = jnp.transpose(x, (1, 0, 2))                     # (T, B, F) time-major
    if Bp != B:
        x_tm = jnp.pad(x_tm, ((0, 0), (0, Bp - B), (0, 0)))

    def full(a):                                           # whole weight for every block
        return pl.BlockSpec(a.shape, lambda b: (0, 0))

    flat = pl.pallas_call(
        _make_fused_kernel(T, H1, H2),
        out_shape=jax.ShapeDtypeStruct((Bp, O), jnp.float32),
        grid=(Bp // TB,),
        in_specs=[pl.BlockSpec((T, TB, F), lambda b: (0, b, 0)),
                  full(pp["wih1"]), full(pp["whh1"]), full(pp["b1"]),
                  full(pp["wih2"]), full(pp["whh2"]), full(pp["b2"]),
                  full(pp["d1w"]), full(pp["d1b"]), full(pp["ow"]), full(pp["ob"])],
        out_specs=pl.BlockSpec((TB, O), lambda b: (b, 0)),
        compiler_params=pltpu.CompilerParams(dimension_semantics=("parallel",)),
    )(x_tm, pp["wih1"], pp["whh1"], pp["b1"],
      pp["wih2"], pp["whh2"], pp["b2"],
      pp["d1w"], pp["d1b"], pp["ow"], pp["ob"])

    out = flat[:B] if Bp != B else flat
    return out.reshape(B, SEQ_OUT, OUT_FEATS)


# ------------------------------ pure-JAX reference -----------------------------
def reference_forward(params, x):
    def lstm(x_tm, w_ih, w_hh, b_ih, b_hh):
        Tt, Bb, _ = x_tm.shape
        H = w_hh.shape[1]

        def step(carry, x_t):
            h, c = carry
            gates = x_t @ w_ih.T + h @ w_hh.T + b_ih + b_hh
            i = jax.nn.sigmoid(gates[:, 0 * H:1 * H])
            f = jax.nn.sigmoid(gates[:, 1 * H:2 * H])
            g = jnp.tanh(gates[:, 2 * H:3 * H])
            o = jax.nn.sigmoid(gates[:, 3 * H:4 * H])
            c = f * c + i * g
            h = o * jnp.tanh(c)
            return (h, c), h

        init = (jnp.zeros((Bb, H), jnp.float32), jnp.zeros((Bb, H), jnp.float32))
        _, hs = lax.scan(step, init, x_tm)
        return hs

    x_tm = jnp.transpose(x, (1, 0, 2))
    h1 = lstm(x_tm, params["l1_w_ih"], params["l1_w_hh"],
              params["l1_b_ih"], params["l1_b_hh"])
    h2 = lstm(h1, params["l2_w_ih"], params["l2_w_hh"],
              params["l2_b_ih"], params["l2_b_hh"])
    h = h2[-1]                                                   # (B, U2)
    z = jnp.maximum(h @ params["d1_w"] + params["d1_b"], 0.0)
    out = z @ params["out_w"] + params["out_b"]
    return out.reshape(x.shape[0], SEQ_OUT, OUT_FEATS)


# ----------------------------------- main --------------------------------------
if __name__ == "__main__":
    key = jax.random.PRNGKey(0)
    pkey, xkey = jax.random.split(key)
    params = init_params(pkey)
    prepped = prepare_params(params)

    B = 2
    x = jax.random.normal(xkey, (B, SEQ_IN, IN_FEATS), dtype=jnp.float32)

    out = lstm_predictor_forward(prepped, x)
    out = jax.block_until_ready(out)
    assert out.shape == (B, SEQ_OUT, OUT_FEATS), out.shape

    ref = jax.block_until_ready(reference_forward(params, x))
    assert jnp.allclose(out, ref, rtol=5e-2, atol=5e-2), "mismatch vs pure-JAX reference"

    print("KERNEL_OK")
</pallas_src>

<mosaic_0001>
module attributes {stable_mosaic.version = 11 : i64} {
  func.func @kernel(%arg0: i32, %arg1: memref<8x2x6xf32, #tpu.memory_space<vmem>>, %arg2: memref<6x128xf32, #tpu.memory_space<vmem>>, %arg3: memref<32x128xbf16, #tpu.memory_space<vmem>>, %arg4: memref<1x128xf32, #tpu.memory_space<vmem>>, %arg5: memref<32x128xbf16, #tpu.memory_space<vmem>>, %arg6: memref<32x128xbf16, #tpu.memory_space<vmem>>, %arg7: memref<1x128xf32, #tpu.memory_space<vmem>>, %arg8: memref<32x32xf32, #tpu.memory_space<vmem>>, %arg9: memref<1x32xf32, #tpu.memory_space<vmem>>, %arg10: memref<32x12xf32, #tpu.memory_space<vmem>>, %arg11: memref<1x12xf32, #tpu.memory_space<vmem>>, %arg12: memref<2x12xf32, #tpu.memory_space<vmem>>) attributes {dimension_semantics = [#tpu.dimension_semantics<parallel>], iteration_bounds = array<i64: 1>, scalar_prefetch = 0 : i64, scratch_operands = 0 : i64, tpu.core_type = #tpu.core_type<tc>, window_params = [{transform_indices = @transform_0, window_bounds = array<i64: 8, 2, 6>}, {pipeline_mode = #tpu.pipeline_mode<synchronous>, transform_indices = @transform_1, window_bounds = array<i64: 6, 128>}, {pipeline_mode = #tpu.pipeline_mode<synchronous>, transform_indices = @transform_2, window_bounds = array<i64: 32, 128>}, {pipeline_mode = #tpu.pipeline_mode<synchronous>, transform_indices = @transform_3, window_bounds = array<i64: 1, 128>}, {pipeline_mode = #tpu.pipeline_mode<synchronous>, transform_indices = @transform_4, window_bounds = array<i64: 32, 128>}, {pipeline_mode = #tpu.pipeline_mode<synchronous>, transform_indices = @transform_5, window_bounds = array<i64: 32, 128>}, {pipeline_mode = #tpu.pipeline_mode<synchronous>, transform_indices = @transform_6, window_bounds = array<i64: 1, 128>}, {pipeline_mode = #tpu.pipeline_mode<synchronous>, transform_indices = @transform_7, window_bounds = array<i64: 32, 32>}, {pipeline_mode = #tpu.pipeline_mode<synchronous>, transform_indices = @transform_8, window_bounds = array<i64: 1, 32>}, {pipeline_mode = #tpu.pipeline_mode<synchronous>, transform_indices = @transform_9, window_bounds = array<i64: 32, 12>}, {pipeline_mode = #tpu.pipeline_mode<synchronous>, transform_indices = @transform_10, window_bounds = array<i64: 1, 12>}, {transform_indices = @transform_11, window_bounds = array<i64: 2, 12>}]} {
    %c0 = arith.constant 0 : index
    %c0_0 = arith.constant 0 : index
    %0 = vector.load %arg2[%c0, %c0_0] : memref<6x128xf32, #tpu.memory_space<vmem>>, vector<6x128xf32>
    %c0_1 = arith.constant 0 : index
    %c0_2 = arith.constant 0 : index
    %1 = vector.load %arg3[%c0_1, %c0_2] : memref<32x128xbf16, #tpu.memory_space<vmem>>, vector<32x128xbf16>
    %c0_3 = arith.constant 0 : index
    %c0_4 = arith.constant 0 : index
    %2 = vector.load %arg4[%c0_3, %c0_4] : memref<1x128xf32, #tpu.memory_space<vmem>>, vector<1x128xf32>
    %c0_5 = arith.constant 0 : index
    %c0_6 = arith.constant 0 : index
    %3 = vector.load %arg5[%c0_5, %c0_6] : memref<32x128xbf16, #tpu.memory_space<vmem>>, vector<32x128xbf16>
    %c0_7 = arith.constant 0 : index
    %c0_8 = arith.constant 0 : index
    %4 = vector.load %arg6[%c0_7, %c0_8] : memref<32x128xbf16, #tpu.memory_space<vmem>>, vector<32x128xbf16>
    %c0_9 = arith.constant 0 : index
    %c0_10 = arith.constant 0 : index
    %5 = vector.load %arg7[%c0_9, %c0_10] : memref<1x128xf32, #tpu.memory_space<vmem>>, vector<1x128xf32>
    %c0_11 = arith.constant 0 : index
    %c0_12 = arith.constant 0 : index
    %c0_13 = arith.constant 0 : index
    %6 = vector.load %arg1[%c0_11, %c0_12, %c0_13] : memref<8x2x6xf32, #tpu.memory_space<vmem>>, vector<1x2x6xf32>
    %7 = vector.shape_cast %6 : vector<1x2x6xf32> to vector<2x6xf32>
    %cst = arith.constant dense<0.000000e+00> : vector<2x128xf32>
    %8 = tpu.matmul %7, %0, %cst {dimension_numbers = #tpu.dot_dimension_numbers<[1], [0], [0], [1], [0, 0, 1, 1], [], []>} : vector<2x6xf32>, vector<6x128xf32>, vector<2x128xf32> -> vector<2x128xf32>
    %9 = vector.broadcast %2 : vector<1x128xf32> to vector<2x128xf32>
    %10 = arith.addf %8, %9 : vector<2x128xf32>
    %11 = arith.negf %10 : vector<2x128xf32>
    %12 = math.exp %11 : vector<2x128xf32>
    %cst_14 = arith.constant 1.000000e+00 : f32
    %13 = vector.broadcast %cst_14 : f32 to vector<2x128xf32>
    %14 = arith.addf %13, %12 : vector<2x128xf32>
    %15 = arith.divf %13, %14 : vector<2x128xf32>
    %16 = vector.extract_strided_slice %10 {offsets = [0, 64], sizes = [2, 32], strides = [1, 1]} : vector<2x128xf32> to vector<2x32xf32>
    %17 = math.tanh %16 : vector<2x32xf32>
    %18 = vector.extract_strided_slice %15 {offsets = [0, 0], sizes = [2, 32], strides = [1, 1]} : vector<2x128xf32> to vector<2x32xf32>
    %19 = arith.mulf %18, %17 : vector<2x32xf32>
    %20 = vector.extract_strided_slice %15 {offsets = [0, 96], sizes = [2, 32], strides = [1, 1]} : vector<2x128xf32> to vector<2x32xf32>
    %21 = math.tanh %19 : vector<2x32xf32>
    %22 = arith.mulf %20, %21 : vector<2x32xf32>
    %c1 = arith.constant 1 : index
    %c0_15 = arith.constant 0 : index
    %c0_16 = arith.constant 0 : index
    %23 = vector.load %arg1[%c1, %c0_15, %c0_16] : memref<8x2x6xf32, #tpu.memory_space<vmem>>, vector<1x2x6xf32>
    %24 = vector.shape_cast %23 : vector<1x2x6xf32> to vector<2x6xf32>
    %cst_17 = arith.constant dense<0.000000e+00> : vector<2x128xf32>
    %25 = tpu.matmul %24, %0, %cst_17 {dimension_numbers = #tpu.dot_dimension_numbers<[1], [0], [0], [1], [0, 0, 1, 1], [], []>} : vector<2x6xf32>, vector<6x128xf32>, vector<2x128xf32> -> vector<2x128xf32>
    %26 = vector.broadcast %2 : vector<1x128xf32> to vector<2x128xf32>
    %27 = arith.addf %25, %26 : vector<2x128xf32>
    %28 = arith.truncf %22 : vector<2x32xf32> to vector<2x32xbf16>
    %cst_18 = arith.constant dense<0.000000e+00> : vector<2x128xf32>
    %29 = tpu.matmul %28, %1, %cst_18 {dimension_numbers = #tpu.dot_dimension_numbers<[1], [0], [0], [1], [0, 0, 1, 1], [], []>} : vector<2x32xbf16>, vector<32x128xbf16>, vector<2x128xf32> -> vector<2x128xf32>
    %30 = arith.addf %27, %29 : vector<2x128xf32>
    %31 = arith.negf %30 : vector<2x128xf32>
    %32 = math.exp %31 : vector<2x128xf32>
    %cst_19 = arith.constant 1.000000e+00 : f32
    %33 = vector.broadcast %cst_19 : f32 to vector<2x128xf32>
    %34 = arith.addf %33, %32 : vector<2x128xf32>
    %35 = arith.divf %33, %34 : vector<2x128xf32>
    %36 = vector.extract_strided_slice %30 {offsets = [0, 64], sizes = [2, 32], strides = [1, 1]} : vector<2x128xf32> to vector<2x32xf32>
    %37 = math.tanh %36 : vector<2x32xf32>
    %38 = vector.extract_strided_slice %35 {offsets = [0, 32], sizes = [2, 32], strides = [1, 1]} : vector<2x128xf32> to vector<2x32xf32>
    %39 = arith.mulf %38, %19 : vector<2x32xf32>
    %40 = vector.extract_strided_slice %35 {offsets = [0, 0], sizes = [2, 32], strides = [1, 1]} : vector<2x128xf32> to vector<2x32xf32>
    %41 = arith.mulf %40, %37 : vector<2x32xf32>
    %42 = arith.addf %39, %41 : vector<2x32xf32>
    %43 = vector.extract_strided_slice %35 {offsets = [0, 96], sizes = [2, 32], strides = [1, 1]} : vector<2x128xf32> to vector<2x32xf32>
    %44 = math.tanh %42 : vector<2x32xf32>
    %45 = arith.mulf %43, %44 : vector<2x32xf32>
    %46 = arith.truncf %22 : vector<2x32xf32> to vector<2x32xbf16>
    %cst_20 = arith.constant dense<0.000000e+00> : vector<2x128xf32>
    %47 = tpu.matmul %46, %3, %cst_20 {dimension_numbers = #tpu.dot_dimension_numbers<[1], [0], [0], [1], [0, 0, 1, 1], [], []>} : vector<2x32xbf16>, vector<32x128xbf16>, vector<2x128xf32> -> vector<2x128xf32>
    %48 = vector.broadcast %5 : vector<1x128xf32> to vector<2x128xf32>
    %49 = arith.addf %47, %48 : vector<2x128xf32>
    %50 = arith.negf %49 : vector<2x128xf32>
    %51 = math.exp %50 : vector<2x128xf32>
    %cst_21 = arith.constant 1.000000e+00 : f32
    %52 = vector.broadcast %cst_21 : f32 to vector<2x128xf32>
    %53 = arith.addf %52, %51 : vector<2x128xf32>
    %54 = arith.divf %52, %53 : vector<2x128xf32>
    %55 = vector.extract_strided_slice %49 {offsets = [0, 64], sizes = [2, 32], strides = [1, 1]} : vector<2x128xf32> to vector<2x32xf32>
    %56 = math.tanh %55 : vector<2x32xf32>
    %57 = vector.extract_strided_slice %54 {offsets = [0, 0], sizes = [2, 32], strides = [1, 1]} : vector<2x128xf32> to vector<2x32xf32>
    %58 = arith.mulf %57, %56 : vector<2x32xf32>
    %59 = vector.extract_strided_slice %54 {offsets = [0, 96], sizes = [2, 32], strides = [1, 1]} : vector<2x128xf32> to vector<2x32xf32>
    %60 = math.tanh %58 : vector<2x32xf32>
    %61 = arith.mulf %59, %60 : vector<2x32xf32>
    %c2 = arith.constant 2 : index
    %c0_22 = arith.constant 0 : index
    %c0_23 = arith.constant 0 : index
    %62 = vector.load %arg1[%c2, %c0_22, %c0_23] : memref<8x2x6xf32, #tpu.memory_space<vmem>>, vector<1x2x6xf32>
    %63 = vector.shape_cast %62 : vector<1x2x6xf32> to vector<2x6xf32>
    %cst_24 = arith.constant dense<0.000000e+00> : vector<2x128xf32>
    %64 = tpu.matmul %63, %0, %cst_24 {dimension_numbers = #tpu.dot_dimension_numbers<[1], [0], [0], [1], [0, 0, 1, 1], [], []>} : vector<2x6xf32>, vector<6x128xf32>, vector<2x128xf32> -> vector<2x128xf32>
    %65 = vector.broadcast %2 : vector<1x128xf32> to vector<2x128xf32>
    %66 = arith.addf %64, %65 : vector<2x128xf32>
    %67 = arith.truncf %45 : vector<2x32xf32> to vector<2x32xbf16>
    %cst_25 = arith.constant dense<0.000000e+00> : vector<2x128xf32>
    %68 = tpu.matmul %67, %1, %cst_25 {dimension_numbers = #tpu.dot_dimension_numbers<[1], [0], [0], [1], [0, 0, 1, 1], [], []>} : vector<2x32xbf16>, vector<32x128xbf16>, vector<2x128xf32> -> vector<2x128xf32>
    %69 = arith.addf %66, %68 : vector<2x128xf32>
    %70 = arith.negf %69 : vector<2x128xf32>
    %71 = math.exp %70 : vector<2x128xf32>
    %cst_26 = arith.constant 1.000000e+00 : f32
    %72 = vector.broadcast %cst_26 : f32 to vector<2x128xf32>
    %73 = arith.addf %72, %71 : vector<2x128xf32>
    %74 = arith.divf %72, %73 : vector<2x128xf32>
    %75 = vector.extract_strided_slice %69 {offsets = [0, 64], sizes = [2, 32], strides = [1, 1]} : vector<2x128xf32> to vector<2x32xf32>
    %76 = math.tanh %75 : vector<2x32xf32>
    %77 = vector.extract_strided_slice %74 {offsets = [0, 32], sizes = [2, 32], strides = [1, 1]} : vector<2x128xf32> to vector<2x32xf32>
    %78 = arith.mulf %77, %42 : vector<2x32xf32>
    %79 = vector.extract_strided_slice %74 {offsets = [0, 0], sizes = [2, 32], strides = [1, 1]} : vector<2x128xf32> to vector<2x32xf32>
    %80 = arith.mulf %79, %76 : vector<2x32xf32>
    %81 = arith.addf %78, %80 : vector<2x32xf32>
    %82 = vector.extract_strided_slice %74 {offsets = [0, 96], sizes = [2, 32], strides = [1, 1]} : vector<2x128xf32> to vector<2x32xf32>
    %83 = math.tanh %81 : vector<2x32xf32>
    %84 = arith.mulf %82, %83 : vector<2x32xf32>
    %85 = arith.truncf %45 : vector<2x32xf32> to vector<2x32xbf16>
    %cst_27 = arith.constant dense<0.000000e+00> : vector<2x128xf32>
    %86 = tpu.matmul %85, %3, %cst_27 {dimension_numbers = #tpu.dot_dimension_numbers<[1], [0], [0], [1], [0, 0, 1, 1], [], []>} : vector<2x32xbf16>, vector<32x128xbf16>, vector<2x128xf32> -> vector<2x128xf32>
    %87 = vector.broadcast %5 : vector<1x128xf32> to vector<2x128xf32>
    %88 = arith.addf %86, %87 : vector<2x128xf32>
    %89 = arith.truncf %61 : vector<2x32xf32> to vector<2x32xbf16>
    %cst_28 = arith.constant dense<0.000000e+00> : vector<2x128xf32>
    %90 = tpu.matmul %89, %4, %cst_28 {dimension_numbers = #tpu.dot_dimension_numbers<[1], [0], [0], [1], [0, 0, 1, 1], [], []>} : vector<2x32xbf16>, vector<32x128xbf16>, vector<2x128xf32> -> vector<2x128xf32>
    %91 = arith.addf %88, %90 : vector<2x128xf32>
    %92 = arith.negf %91 : vector<2x128xf32>
    %93 = math.exp %92 : vector<2x128xf32>
    %cst_29 = arith.constant 1.000000e+00 : f32
    %94 = vector.broadcast %cst_29 : f32 to vector<2x128xf32>
    %95 = arith.addf %94, %93 : vector<2x128xf32>
    %96 = arith.divf %94, %95 : vector<2x128xf32>
    %97 = vector.extract_strided_slice %91 {offsets = [0, 64], sizes = [2, 32], strides = [1, 1]} : vector<2x128xf32> to vector<2x32xf32>
    %98 = math.tanh %97 : vector<2x32xf32>
    %99 = vector.extract_strided_slice %96 {offsets = [0, 32], sizes = [2, 32], strides = [1, 1]} : vector<2x128xf32> to vector<2x32xf32>
    %100 = arith.mulf %99, %58 : vector<2x32xf32>
    %101 = vector.extract_strided_slice %96 {offsets = [0, 0], sizes = [2, 32], strides = [1, 1]} : vector<2x128xf32> to vector<2x32xf32>
    %102 = arith.mulf %101, %98 : vector<2x32xf32>
    %103 = arith.addf %100, %102 : vector<2x32xf32>
    %104 = vector.extract_strided_slice %96 {offsets = [0, 96], sizes = [2, 32], strides = [1, 1]} : vector<2x128xf32> to vector<2x32xf32>
    %105 = math.tanh %103 : vector<2x32xf32>
    %106 = arith.mulf %104, %105 : vector<2x32xf32>
    %c3 = arith.constant 3 : index
    %c0_30 = arith.constant 0 : index
    %c0_31 = arith.constant 0 : index
    %107 = vector.load %arg1[%c3, %c0_30, %c0_31] : memref<8x2x6xf32, #tpu.memory_space<vmem>>, vector<1x2x6xf32>
    %108 = vector.shape_cast %107 : vector<1x2x6xf32> to vector<2x6xf32>
    %cst_32 = arith.constant dense<0.000000e+00> : vector<2x128xf32>
    %109 = tpu.matmul %108, %0, %cst_32 {dimension_numbers = #tpu.dot_dimension_numbers<[1], [0], [0], [1], [0, 0, 1, 1], [], []>} : vector<2x6xf32>, vector<6x128xf32>, vector<2x128xf32> -> vector<2x128xf32>
    %110 = vector.broadcast %2 : vector<1x128xf32> to vector<2x128xf32>
    %111 = arith.addf %109, %110 : vector<2x128xf32>
    %112 = arith.truncf %84 : vector<2x32xf32> to vector<2x32xbf16>
    %cst_33 = arith.constant dense<0.000000e+00> : vector<2x128xf32>
    %113 = tpu.matmul %112, %1, %cst_33 {dimension_numbers = #tpu.dot_dimension_numbers<[1], [0], [0], [1], [0, 0, 1, 1], [], []>} : vector<2x32xbf16>, vector<32x128xbf16>, vector<2x128xf32> -> vector<2x128xf32>
    %114 = arith.addf %111, %113 : vector<2x128xf32>
    %115 = arith.negf %114 : vector<2x128xf32>
    %116 = math.exp %115 : vector<2x128xf32>
    %cst_34 = arith.constant 1.000000e+00 : f32
    %117 = vector.broadcast %cst_34 : f32 to vector<2x128xf32>
    %118 = arith.addf %117, %116 : vector<2x128xf32>
    %119 = arith.divf %117, %118 : vector<2x128xf32>
    %120 = vector.extract_strided_slice %114 {offsets = [0, 64], sizes = [2, 32], strides = [1, 1]} : vector<2x128xf32> to vector<2x32xf32>
    %121 = math.tanh %120 : vector<2x32xf32>
    %122 = vector.extract_strided_slice %119 {offsets = [0, 32], sizes = [2, 32], strides = [1, 1]} : vector<2x128xf32> to vector<2x32xf32>
    %123 = arith.mulf %122, %81 : vector<2x32xf32>
    %124 = vector.extract_strided_slice %119 {offsets = [0, 0], sizes = [2, 32], strides = [1, 1]} : vector<2x128xf32> to vector<2x32xf32>
    %125 = arith.mulf %124, %121 : vector<2x32xf32>
    %126 = arith.addf %123, %125 : vector<2x32xf32>
    %127 = vector.extract_strided_slice %119 {offsets = [0, 96], sizes = [2, 32], strides = [1, 1]} : vector<2x128xf32> to vector<2x32xf32>
    %128 = math.tanh %126 : vector<2x32xf32>
    %129 = arith.mulf %127, %128 : vector<2x32xf32>
    %130 = arith.truncf %84 : vector<2x32xf32> to vector<2x32xbf16>
    %cst_35 = arith.constant dense<0.000000e+00> : vector<2x128xf32>
    %131 = tpu.matmul %130, %3, %cst_35 {dimension_numbers = #tpu.dot_dimension_numbers<[1], [0], [0], [1], [0, 0, 1, 1], [], []>} : vector<2x32xbf16>, vector<32x128xbf16>, vector<2x128xf32> -> vector<2x128xf32>
    %132 = vector.broadcast %5 : vector<1x128xf32> to vector<2x128xf32>
    %133 = arith.addf %131, %132 : vector<2x128xf32>
    %134 = arith.truncf %106 : vector<2x32xf32> to vector<2x32xbf16>
    %cst_36 = arith.constant dense<0.000000e+00> : vector<2x128xf32>
    %135 = tpu.matmul %134, %4, %cst_36 {dimension_numbers = #tpu.dot_dimension_numbers<[1], [0], [0], [1], [0, 0, 1, 1], [], []>} : vector<2x32xbf16>, vector<32x128xbf16>, vector<2x128xf32> -> vector<2x128xf32>
    %136 = arith.addf %133, %135 : vector<2x128xf32>
    %137 = arith.negf %136 : vector<2x128xf32>
    %138 = math.exp %137 : vector<2x128xf32>
    %cst_37 = arith.constant 1.000000e+00 : f32
    %139 = vector.broadcast %cst_37 : f32 to vector<2x128xf32>
    %140 = arith.addf %139, %138 : vector<2x128xf32>
    %141 = arith.divf %139, %140 : vector<2x128xf32>
    %142 = vector.extract_strided_slice %136 {offsets = [0, 64], sizes = [2, 32], strides = [1, 1]} : vector<2x128xf32> to vector<2x32xf32>
    %143 = math.tanh %142 : vector<2x32xf32>
    %144 = vector.extract_strided_slice %141 {offsets = [0, 32], sizes = [2, 32], strides = [1, 1]} : vector<2x128xf32> to vector<2x32xf32>
    %145 = arith.mulf %144, %103 : vector<2x32xf32>
    %146 = vector.extract_strided_slice %141 {offsets = [0, 0], sizes = [2, 32], strides = [1, 1]} : vector<2x128xf32> to vector<2x32xf32>
    %147 = arith.mulf %146, %143 : vector<2x32xf32>
    %148 = arith.addf %145, %147 : vector<2x32xf32>
    %149 = vector.extract_strided_slice %141 {offsets = [0, 96], sizes = [2, 32], strides = [1, 1]} : vector<2x128xf32> to vector<2x32xf32>
    %150 = math.tanh %148 : vector<2x32xf32>
    %151 = arith.mulf %149, %150 : vector<2x32xf32>
    %c4 = arith.constant 4 : index
    %c0_38 = arith.constant 0 : index
    %c0_39 = arith.constant 0 : index
    %152 = vector.load %arg1[%c4, %c0_38, %c0_39] : memref<8x2x6xf32, #tpu.memory_space<vmem>>, vector<1x2x6xf32>
    %153 = vector.shape_cast %152 : vector<1x2x6xf32> to vector<2x6xf32>
    %cst_40 = arith.constant dense<0.000000e+00> : vector<2x128xf32>
    %154 = tpu.matmul %153, %0, %cst_40 {dimension_numbers = #tpu.dot_dimension_numbers<[1], [0], [0], [1], [0, 0, 1, 1], [], []>} : vector<2x6xf32>, vector<6x128xf32>, vector<2x128xf32> -> vector<2x128xf32>
    %155 = vector.broadcast %2 : vector<1x128xf32> to vector<2x128xf32>
    %156 = arith.addf %154, %155 : vector<2x128xf32>
    %157 = arith.truncf %129 : vector<2x32xf32> to vector<2x32xbf16>
    %cst_41 = arith.constant dense<0.000000e+00> : vector<2x128xf32>
    %158 = tpu.matmul %157, %1, %cst_41 {dimension_numbers = #tpu.dot_dimension_numbers<[1], [0], [0], [1], [0, 0, 1, 1], [], []>} : vector<2x32xbf16>, vector<32x128xbf16>, vector<2x128xf32> -> vector<2x128xf32>
    %159 = arith.addf %156, %158 : vector<2x128xf32>
    %160 = arith.negf %159 : vector<2x128xf32>
    %161 = math.exp %160 : vector<2x128xf32>
    %cst_42 = arith.constant 1.000000e+00 : f32
    %162 = vector.broadcast %cst_42 : f32 to vector<2x128xf32>
    %163 = arith.addf %162, %161 : vector<2x128xf32>
    %164 = arith.divf %162, %163 : vector<2x128xf32>
    %165 = vector.extract_strided_slice %159 {offsets = [0, 64], sizes = [2, 32], strides = [1, 1]} : vector<2x128xf32> to vector<2x32xf32>
    %166 = math.tanh %165 : vector<2x32xf32>
    %167 = vector.extract_strided_slice %164 {offsets = [0, 32], sizes = [2, 32], strides = [1, 1]} : vector<2x128xf32> to vector<2x32xf32>
    %168 = arith.mulf %167, %126 : vector<2x32xf32>
    %169 = vector.extract_strided_slice %164 {offsets = [0, 0], sizes = [2, 32], strides = [1, 1]} : vector<2x128xf32> to vector<2x32xf32>
    %170 = arith.mulf %169, %166 : vector<2x32xf32>
    %171 = arith.addf %168, %170 : vector<2x32xf32>
    %172 = vector.extract_strided_slice %164 {offsets = [0, 96], sizes = [2, 32], strides = [1, 1]} : vector<2x128xf32> to vector<2x32xf32>
    %173 = math.tanh %171 : vector<2x32xf32>
    %174 = arith.mulf %172, %173 : vector<2x32xf32>
    %175 = arith.truncf %129 : vector<2x32xf32> to vector<2x32xbf16>
    %cst_43 = arith.constant dense<0.000000e+00> : vector<2x128xf32>
    %176 = tpu.matmul %175, %3, %cst_43 {dimension_numbers = #tpu.dot_dimension_numbers<[1], [0], [0], [1], [0, 0, 1, 1], [], []>} : vector<2x32xbf16>, vector<32x128xbf16>, vector<2x128xf32> -> vector<2x128xf32>
    %177 = vector.broadcast %5 : vector<1x128xf32> to vector<2x128xf32>
    %178 = arith.addf %176, %177 : vector<2x128xf32>
    %179 = arith.truncf %151 : vector<2x32xf32> to vector<2x32xbf16>
    %cst_44 = arith.constant dense<0.000000e+00> : vector<2x128xf32>
    %180 = tpu.matmul %179, %4, %cst_44 {dimension_numbers = #tpu.dot_dimension_numbers<[1], [0], [0], [1], [0, 0, 1, 1], [], []>} : vector<2x32xbf16>, vector<32x128xbf16>, vector<2x128xf32> -> vector<2x128xf32>
    %181 = arith.addf %178, %180 : vector<2x128xf32>
    %182 = arith.negf %181 : vector<2x128xf32>
    %183 = math.exp %182 : vector<2x128xf32>
    %cst_45 = arith.constant 1.000000e+00 : f32
    %184 = vector.broadcast %cst_45 : f32 to vector<2x128xf32>
    %185 = arith.addf %184, %183 : vector<2x128xf32>
    %186 = arith.divf %184, %185 : vector<2x128xf32>
    %187 = vector.extract_strided_slice %181 {offsets = [0, 64], sizes = [2, 32], strides = [1, 1]} : vector<2x128xf32> to vector<2x32xf32>
    %188 = math.tanh %187 : vector<2x32xf32>
    %189 = vector.extract_strided_slice %186 {offsets = [0, 32], sizes = [2, 32], strides = [1, 1]} : vector<2x128xf32> to vector<2x32xf32>
    %190 = arith.mulf %189, %148 : vector<2x32xf32>
    %191 = vector.extract_strided_slice %186 {offsets = [0, 0], sizes = [2, 32], strides = [1, 1]} : vector<2x128xf32> to vector<2x32xf32>
    %192 = arith.mulf %191, %188 : vector<2x32xf32>
    %193 = arith.addf %190, %192 : vector<2x32xf32>
    %194 = vector.extract_strided_slice %186 {offsets = [0, 96], sizes = [2, 32], strides = [1, 1]} : vector<2x128xf32> to vector<2x32xf32>
    %195 = math.tanh %193 : vector<2x32xf32>
    %196 = arith.mulf %194, %195 : vector<2x32xf32>
    %c5 = arith.constant 5 : index
    %c0_46 = arith.constant 0 : index
    %c0_47 = arith.constant 0 : index
    %197 = vector.load %arg1[%c5, %c0_46, %c0_47] : memref<8x2x6xf32, #tpu.memory_space<vmem>>, vector<1x2x6xf32>
    %198 = vector.shape_cast %197 : vector<1x2x6xf32> to vector<2x6xf32>
    %cst_48 = arith.constant dense<0.000000e+00> : vector<2x128xf32>
    %199 = tpu.matmul %198, %0, %cst_48 {dimension_numbers = #tpu.dot_dimension_numbers<[1], [0], [0], [1], [0, 0, 1, 1], [], []>} : vector<2x6xf32>, vector<6x128xf32>, vector<2x128xf32> -> vector<2x128xf32>
    %200 = vector.broadcast %2 : vector<1x128xf32> to vector<2x128xf32>
    %201 = arith.addf %199, %200 : vector<2x128xf32>
    %202 = arith.truncf %174 : vector<2x32xf32> to vector<2x32xbf16>
    %cst_49 = arith.constant dense<0.000000e+00> : vector<2x128xf32>
    %203 = tpu.matmul %202, %1, %cst_49 {dimension_numbers = #tpu.dot_dimension_numbers<[1], [0], [0], [1], [0, 0, 1, 1], [], []>} : vector<2x32xbf16>, vector<32x128xbf16>, vector<2x128xf32> -> vector<2x128xf32>
    %204 = arith.addf %201, %203 : vector<2x128xf32>
    %205 = arith.negf %204 : vector<2x128xf32>
    %206 = math.exp %205 : vector<2x128xf32>
    %cst_50 = arith.constant 1.000000e+00 : f32
    %207 = vector.broadcast %cst_50 : f32 to vector<2x128xf32>
    %208 = arith.addf %207, %206 : vector<2x128xf32>
    %209 = arith.divf %207, %208 : vector<2x128xf32>
    %210 = vector.extract_strided_slice %204 {offsets = [0, 64], sizes = [2, 32], strides = [1, 1]} : vector<2x128xf32> to vector<2x32xf32>
    %211 = math.tanh %210 : vector<2x32xf32>
    %212 = vector.extract_strided_slice %209 {offsets = [0, 32], sizes = [2, 32], strides = [1, 1]} : vector<2x128xf32> to vector<2x32xf32>
    %213 = arith.mulf %212, %171 : vector<2x32xf32>
    %214 = vector.extract_strided_slice %209 {offsets = [0, 0], sizes = [2, 32], strides = [1, 1]} : vector<2x128xf32> to vector<2x32xf32>
    %215 = arith.mulf %214, %211 : vector<2x32xf32>
    %216 = arith.addf %213, %215 : vector<2x32xf32>
    %217 = vector.extract_strided_slice %209 {offsets = [0, 96], sizes = [2, 32], strides = [1, 1]} : vector<2x128xf32> to vector<2x32xf32>
    %218 = math.tanh %216 : vector<2x32xf32>
    %219 = arith.mulf %217, %218 : vector<2x32xf32>
    %220 = arith.truncf %174 : vector<2x32xf32> to vector<2x32xbf16>
    %cst_51 = arith.constant dense<0.000000e+00> : vector<2x128xf32>
    %221 = tpu.matmul %220, %3, %cst_51 {dimension_numbers = #tpu.dot_dimension_numbers<[1], [0], [0], [1], [0, 0, 1, 1], [], []>} : vector<2x32xbf16>, vector<32x128xbf16>, vector<2x128xf32> -> vector<2x128xf32>
    %222 = vector.broadcast %5 : vector<1x128xf32> to vector<2x128xf32>
    %223 = arith.addf %221, %222 : vector<2x128xf32>
    %224 = arith.truncf %196 : vector<2x32xf32> to vector<2x32xbf16>
    %cst_52 = arith.constant dense<0.000000e+00> : vector<2x128xf32>
    %225 = tpu.matmul %224, %4, %cst_52 {dimension_numbers = #tpu.dot_dimension_numbers<[1], [0], [0], [1], [0, 0, 1, 1], [], []>} : vector<2x32xbf16>, vector<32x128xbf16>, vector<2x128xf32> -> vector<2x128xf32>
    %226 = arith.addf %223, %225 : vector<2x128xf32>
    %227 = arith.negf %226 : vector<2x128xf32>
    %228 = math.exp %227 : vector<2x128xf32>
    %cst_53 = arith.constant 1.000000e+00 : f32
    %229 = vector.broadcast %cst_53 : f32 to vector<2x128xf32>
    %230 = arith.addf %229, %228 : vector<2x128xf32>
    %231 = arith.divf %229, %230 : vector<2x128xf32>
    %232 = vector.extract_strided_slice %226 {offsets = [0, 64], sizes = [2, 32], strides = [1, 1]} : vector<2x128xf32> to vector<2x32xf32>
    %233 = math.tanh %232 : vector<2x32xf32>
    %234 = vector.extract_strided_slice %231 {offsets = [0, 32], sizes = [2, 32], strides = [1, 1]} : vector<2x128xf32> to vector<2x32xf32>
    %235 = arith.mulf %234, %193 : vector<2x32xf32>
    %236 = vector.extract_strided_slice %231 {offsets = [0, 0], sizes = [2, 32], strides = [1, 1]} : vector<2x128xf32> to vector<2x32xf32>
    %237 = arith.mulf %236, %233 : vector<2x32xf32>
    %238 = arith.addf %235, %237 : vector<2x32xf32>
    %239 = vector.extract_strided_slice %231 {offsets = [0, 96], sizes = [2, 32], strides = [1, 1]} : vector<2x128xf32> to vector<2x32xf32>
    %240 = math.tanh %238 : vector<2x32xf32>
    %241 = arith.mulf %239, %240 : vector<2x32xf32>
    %c6 = arith.constant 6 : index
    %c0_54 = arith.constant 0 : index
    %c0_55 = arith.constant 0 : index
    %242 = vector.load %arg1[%c6, %c0_54, %c0_55] : memref<8x2x6xf32, #tpu.memory_space<vmem>>, vector<1x2x6xf32>
    %243 = vector.shape_cast %242 : vector<1x2x6xf32> to vector<2x6xf32>
    %cst_56 = arith.constant dense<0.000000e+00> : vector<2x128xf32>
    %244 = tpu.matmul %243, %0, %cst_56 {dimension_numbers = #tpu.dot_dimension_numbers<[1], [0], [0], [1], [0, 0, 1, 1], [], []>} : vector<2x6xf32>, vector<6x128xf32>, vector<2x128xf32> -> vector<2x128xf32>
    %245 = vector.broadcast %2 : vector<1x128xf32> to vector<2x128xf32>
    %246 = arith.addf %244, %245 : vector<2x128xf32>
    %247 = arith.truncf %219 : vector<2x32xf32> to vector<2x32xbf16>
    %cst_57 = arith.constant dense<0.000000e+00> : vector<2x128xf32>
    %248 = tpu.matmul %247, %1, %cst_57 {dimension_numbers = #tpu.dot_dimension_numbers<[1], [0], [0], [1], [0, 0, 1, 1], [], []>} : vector<2x32xbf16>, vector<32x128xbf16>, vector<2x128xf32> -> vector<2x128xf32>
    %249 = arith.addf %246, %248 : vector<2x128xf32>
    %250 = arith.negf %249 : vector<2x128xf32>
    %251 = math.exp %250 : vector<2x128xf32>
    %cst_58 = arith.constant 1.000000e+00 : f32
    %252 = vector.broadcast %cst_58 : f32 to vector<2x128xf32>
    %253 = arith.addf %252, %251 : vector<2x128xf32>
    %254 = arith.divf %252, %253 : vector<2x128xf32>
    %255 = vector.extract_strided_slice %249 {offsets = [0, 64], sizes = [2, 32], strides = [1, 1]} : vector<2x128xf32> to vector<2x32xf32>
    %256 = math.tanh %255 : vector<2x32xf32>
    %257 = vector.extract_strided_slice %254 {offsets = [0, 32], sizes = [2, 32], strides = [1, 1]} : vector<2x128xf32> to vector<2x32xf32>
    %258 = arith.mulf %257, %216 : vector<2x32xf32>
    %259 = vector.extract_strided_slice %254 {offsets = [0, 0], sizes = [2, 32], strides = [1, 1]} : vector<2x128xf32> to vector<2x32xf32>
    %260 = arith.mulf %259, %256 : vector<2x32xf32>
    %261 = arith.addf %258, %260 : vector<2x32xf32>
    %262 = vector.extract_strided_slice %254 {offsets = [0, 96], sizes = [2, 32], strides = [1, 1]} : vector<2x128xf32> to vector<2x32xf32>
    %263 = math.tanh %261 : vector<2x32xf32>
    %264 = arith.mulf %262, %263 : vector<2x32xf32>
    %265 = arith.truncf %219 : vector<2x32xf32> to vector<2x32xbf16>
    %cst_59 = arith.constant dense<0.000000e+00> : vector<2x128xf32>
    %266 = tpu.matmul %265, %3, %cst_59 {dimension_numbers = #tpu.dot_dimension_numbers<[1], [0], [0], [1], [0, 0, 1, 1], [], []>} : vector<2x32xbf16>, vector<32x128xbf16>, vector<2x128xf32> -> vector<2x128xf32>
    %267 = vector.broadcast %5 : vector<1x128xf32> to vector<2x128xf32>
    %268 = arith.addf %266, %267 : vector<2x128xf32>
    %269 = arith.truncf %241 : vector<2x32xf32> to vector<2x32xbf16>
    %cst_60 = arith.constant dense<0.000000e+00> : vector<2x128xf32>
    %270 = tpu.matmul %269, %4, %cst_60 {dimension_numbers = #tpu.dot_dimension_numbers<[1], [0], [0], [1], [0, 0, 1, 1], [], []>} : vector<2x32xbf16>, vector<32x128xbf16>, vector<2x128xf32> -> vector<2x128xf32>
    %271 = arith.addf %268, %270 : vector<2x128xf32>
    %272 = arith.negf %271 : vector<2x128xf32>
    %273 = math.exp %272 : vector<2x128xf32>
    %cst_61 = arith.constant 1.000000e+00 : f32
    %274 = vector.broadcast %cst_61 : f32 to vector<2x128xf32>
    %275 = arith.addf %274, %273 : vector<2x128xf32>
    %276 = arith.divf %274, %275 : vector<2x128xf32>
    %277 = vector.extract_strided_slice %271 {offsets = [0, 64], sizes = [2, 32], strides = [1, 1]} : vector<2x128xf32> to vector<2x32xf32>
    %278 = math.tanh %277 : vector<2x32xf32>
    %279 = vector.extract_strided_slice %276 {offsets = [0, 32], sizes = [2, 32], strides = [1, 1]} : vector<2x128xf32> to vector<2x32xf32>
    %280 = arith.mulf %279, %238 : vector<2x32xf32>
    %281 = vector.extract_strided_slice %276 {offsets = [0, 0], sizes = [2, 32], strides = [1, 1]} : vector<2x128xf32> to vector<2x32xf32>
    %282 = arith.mulf %281, %278 : vector<2x32xf32>
    %283 = arith.addf %280, %282 : vector<2x32xf32>
    %284 = vector.extract_strided_slice %276 {offsets = [0, 96], sizes = [2, 32], strides = [1, 1]} : vector<2x128xf32> to vector<2x32xf32>
    %285 = math.tanh %283 : vector<2x32xf32>
    %286 = arith.mulf %284, %285 : vector<2x32xf32>
    %c7 = arith.constant 7 : index
    %c0_62 = arith.constant 0 : index
    %c0_63 = arith.constant 0 : index
    %287 = vector.load %arg1[%c7, %c0_62, %c0_63] : memref<8x2x6xf32, #tpu.memory_space<vmem>>, vector<1x2x6xf32>
    %288 = vector.shape_cast %287 : vector<1x2x6xf32> to vector<2x6xf32>
    %cst_64 = arith.constant dense<0.000000e+00> : vector<2x128xf32>
    %289 = tpu.matmul %288, %0, %cst_64 {dimension_numbers = #tpu.dot_dimension_numbers<[1], [0], [0], [1], [0, 0, 1, 1], [], []>} : vector<2x6xf32>, vector<6x128xf32>, vector<2x128xf32> -> vector<2x128xf32>
    %290 = vector.broadcast %2 : vector<1x128xf32> to vector<2x128xf32>
    %291 = arith.addf %289, %290 : vector<2x128xf32>
    %292 = arith.truncf %264 : vector<2x32xf32> to vector<2x32xbf16>
    %cst_65 = arith.constant dense<0.000000e+00> : vector<2x128xf32>
    %293 = tpu.matmul %292, %1, %cst_65 {dimension_numbers = #tpu.dot_dimension_numbers<[1], [0], [0], [1], [0, 0, 1, 1], [], []>} : vector<2x32xbf16>, vector<32x128xbf16>, vector<2x128xf32> -> vector<2x128xf32>
    %294 = arith.addf %291, %293 : vector<2x128xf32>
    %295 = arith.negf %294 : vector<2x128xf32>
    %296 = math.exp %295 : vector<2x128xf32>
    %cst_66 = arith.constant 1.000000e+00 : f32
    %297 = vector.broadcast %cst_66 : f32 to vector<2x128xf32>
    %298 = arith.addf %297, %296 : vector<2x128xf32>
    %299 = arith.divf %297, %298 : vector<2x128xf32>
    %300 = vector.extract_strided_slice %294 {offsets = [0, 64], sizes = [2, 32], strides = [1, 1]} : vector<2x128xf32> to vector<2x32xf32>
    %301 = math.tanh %300 : vector<2x32xf32>
    %302 = vector.extract_strided_slice %299 {offsets = [0, 32], sizes = [2, 32], strides = [1, 1]} : vector<2x128xf32> to vector<2x32xf32>
    %303 = arith.mulf %302, %261 : vector<2x32xf32>
    %304 = vector.extract_strided_slice %299 {offsets = [0, 0], sizes = [2, 32], strides = [1, 1]} : vector<2x128xf32> to vector<2x32xf32>
    %305 = arith.mulf %304, %301 : vector<2x32xf32>
    %306 = arith.addf %303, %305 : vector<2x32xf32>
    %307 = vector.extract_strided_slice %299 {offsets = [0, 96], sizes = [2, 32], strides = [1, 1]} : vector<2x128xf32> to vector<2x32xf32>
    %308 = math.tanh %306 : vector<2x32xf32>
    %309 = arith.mulf %307, %308 : vector<2x32xf32>
    %310 = arith.truncf %264 : vector<2x32xf32> to vector<2x32xbf16>
    %cst_67 = arith.constant dense<0.000000e+00> : vector<2x128xf32>
    %311 = tpu.matmul %310, %3, %cst_67 {dimension_numbers = #tpu.dot_dimension_numbers<[1], [0], [0], [1], [0, 0, 1, 1], [], []>} : vector<2x32xbf16>, vector<32x128xbf16>, vector<2x128xf32> -> vector<2x128xf32>
    %312 = vector.broadcast %5 : vector<1x128xf32> to vector<2x128xf32>
    %313 = arith.addf %311, %312 : vector<2x128xf32>
    %314 = arith.truncf %286 : vector<2x32xf32> to vector<2x32xbf16>
    %cst_68 = arith.constant dense<0.000000e+00> : vector<2x128xf32>
    %315 = tpu.matmul %314, %4, %cst_68 {dimension_numbers = #tpu.dot_dimension_numbers<[1], [0], [0], [1], [0, 0, 1, 1], [], []>} : vector<2x32xbf16>, vector<32x128xbf16>, vector<2x128xf32> -> vector<2x128xf32>
    %316 = arith.addf %313, %315 : vector<2x128xf32>
    %317 = arith.negf %316 : vector<2x128xf32>
    %318 = math.exp %317 : vector<2x128xf32>
    %cst_69 = arith.constant 1.000000e+00 : f32
    %319 = vector.broadcast %cst_69 : f32 to vector<2x128xf32>
    %320 = arith.addf %319, %318 : vector<2x128xf32>
    %321 = arith.divf %319, %320 : vector<2x128xf32>
    %322 = vector.extract_strided_slice %316 {offsets = [0, 64], sizes = [2, 32], strides = [1, 1]} : vector<2x128xf32> to vector<2x32xf32>
    %323 = math.tanh %322 : vector<2x32xf32>
    %324 = vector.extract_strided_slice %321 {offsets = [0, 32], sizes = [2, 32], strides = [1, 1]} : vector<2x128xf32> to vector<2x32xf32>
    %325 = arith.mulf %324, %283 : vector<2x32xf32>
    %326 = vector.extract_strided_slice %321 {offsets = [0, 0], sizes = [2, 32], strides = [1, 1]} : vector<2x128xf32> to vector<2x32xf32>
    %327 = arith.mulf %326, %323 : vector<2x32xf32>
    %328 = arith.addf %325, %327 : vector<2x32xf32>
    %329 = vector.extract_strided_slice %321 {offsets = [0, 96], sizes = [2, 32], strides = [1, 1]} : vector<2x128xf32> to vector<2x32xf32>
    %330 = math.tanh %328 : vector<2x32xf32>
    %331 = arith.mulf %329, %330 : vector<2x32xf32>
    %332 = arith.truncf %309 : vector<2x32xf32> to vector<2x32xbf16>
    %cst_70 = arith.constant dense<0.000000e+00> : vector<2x128xf32>
    %333 = tpu.matmul %332, %3, %cst_70 {dimension_numbers = #tpu.dot_dimension_numbers<[1], [0], [0], [1], [0, 0, 1, 1], [], []>} : vector<2x32xbf16>, vector<32x128xbf16>, vector<2x128xf32> -> vector<2x128xf32>
    %334 = vector.broadcast %5 : vector<1x128xf32> to vector<2x128xf32>
    %335 = arith.addf %333, %334 : vector<2x128xf32>
    %336 = arith.truncf %331 : vector<2x32xf32> to vector<2x32xbf16>
    %cst_71 = arith.constant dense<0.000000e+00> : vector<2x128xf32>
    %337 = tpu.matmul %336, %4, %cst_71 {dimension_numbers = #tpu.dot_dimension_numbers<[1], [0], [0], [1], [0, 0, 1, 1], [], []>} : vector<2x32xbf16>, vector<32x128xbf16>, vector<2x128xf32> -> vector<2x128xf32>
    %338 = arith.addf %335, %337 : vector<2x128xf32>
    %339 = arith.negf %338 : vector<2x128xf32>
    %340 = math.exp %339 : vector<2x128xf32>
    %cst_72 = arith.constant 1.000000e+00 : f32
    %341 = vector.broadcast %cst_72 : f32 to vector<2x128xf32>
    %342 = arith.addf %341, %340 : vector<2x128xf32>
    %343 = arith.divf %341, %342 : vector<2x128xf32>
    %344 = vector.extract_strided_slice %338 {offsets = [0, 64], sizes = [2, 32], strides = [1, 1]} : vector<2x128xf32> to vector<2x32xf32>
    %345 = math.tanh %344 : vector<2x32xf32>
    %346 = vector.extract_strided_slice %343 {offsets = [0, 32], sizes = [2, 32], strides = [1, 1]} : vector<2x128xf32> to vector<2x32xf32>
    %347 = arith.mulf %346, %328 : vector<2x32xf32>
    %348 = vector.extract_strided_slice %343 {offsets = [0, 0], sizes = [2, 32], strides = [1, 1]} : vector<2x128xf32> to vector<2x32xf32>
    %349 = arith.mulf %348, %345 : vector<2x32xf32>
    %350 = arith.addf %347, %349 : vector<2x32xf32>
    %351 = vector.extract_strided_slice %343 {offsets = [0, 96], sizes = [2, 32], strides = [1, 1]} : vector<2x128xf32> to vector<2x32xf32>
    %352 = math.tanh %350 : vector<2x32xf32>
    %353 = arith.mulf %351, %352 : vector<2x32xf32>
    %c0_73 = arith.constant 0 : index
    %c0_74 = arith.constant 0 : index
    %354 = vector.load %arg8[%c0_73, %c0_74] : memref<32x32xf32, #tpu.memory_space<vmem>>, vector<32x32xf32>
    %cst_75 = arith.constant dense<0.000000e+00> : vector<2x32xf32>
    %355 = tpu.matmul %353, %354, %cst_75 {dimension_numbers = #tpu.dot_dimension_numbers<[1], [0], [0], [1], [0, 0, 1, 1], [], []>} : vector<2x32xf32>, vector<32x32xf32>, vector<2x32xf32> -> vector<2x32xf32>
    %c0_76 = arith.constant 0 : index
    %c0_77 = arith.constant 0 : index
    %356 = vector.load %arg9[%c0_76, %c0_77] : memref<1x32xf32, #tpu.memory_space<vmem>>, vector<1x32xf32>
    %357 = vector.broadcast %356 : vector<1x32xf32> to vector<2x32xf32>
    %358 = arith.addf %355, %357 : vector<2x32xf32>
    %cst_78 = arith.constant 0.000000e+00 : f32
    %359 = vector.broadcast %cst_78 : f32 to vector<2x32xf32>
    %360 = arith.maximumf %358, %359 : vector<2x32xf32>
    %c0_79 = arith.constant 0 : index
    %c0_80 = arith.constant 0 : index
    %361 = vector.load %arg10[%c0_79, %c0_80] : memref<32x12xf32, #tpu.memory_space<vmem>>, vector<32x12xf32>
    %cst_81 = arith.constant dense<0.000000e+00> : vector<2x12xf32>
    %362 = tpu.matmul %360, %361, %cst_81 {dimension_numbers = #tpu.dot_dimension_numbers<[1], [0], [0], [1], [0, 0, 1, 1], [], []>} : vector<2x32xf32>, vector<32x12xf32>, vector<2x12xf32> -> vector<2x12xf32>
    %c0_82 = arith.constant 0 : index
    %c0_83 = arith.constant 0 : index
    %363 = vector.load %arg11[%c0_82, %c0_83] : memref<1x12xf32, #tpu.memory_space<vmem>>, vector<1x12xf32>
    %364 = vector.broadcast %363 : vector<1x12xf32> to vector<2x12xf32>
    %365 = arith.addf %362, %364 : vector<2x12xf32>
    %c0_84 = arith.constant 0 : index
    %c0_85 = arith.constant 0 : index
    %366 = vector.load %arg12[%c0_84, %c0_85] : memref<2x12xf32, #tpu.memory_space<vmem>>, vector<2x12xf32>
    tpu.vector_store %arg12[%c0_84, %c0_85], %365 {strides = array<i32>} : memref<2x12xf32, #tpu.memory_space<vmem>>, vector<2x12xf32>,
    return
  }
  func.func @transform_0(%arg0: i32) -> (i32, i32, i32) {
    %c0_i32 = arith.constant 0 : i32
    %c0_i32_0 = arith.constant 0 : i32
    %c0_i32_1 = arith.constant 0 : i32
    return %c0_i32, %arg0, %c0_i32_0 : i32, i32, i32
  }
  func.func @transform_1(%arg0: i32) -> (i32, i32) {
    %c0_i32 = arith.constant 0 : i32
    %c0_i32_0 = arith.constant 0 : i32
    %c0_i32_1 = arith.constant 0 : i32
    return %c0_i32, %c0_i32_0 : i32, i32
  }
  func.func @transform_2(%arg0: i32) -> (i32, i32) {
    %c0_i32 = arith.constant 0 : i32
    %c0_i32_0 = arith.constant 0 : i32
    %c0_i32_1 = arith.constant 0 : i32
    return %c0_i32, %c0_i32_0 : i32, i32
  }
  func.func @transform_3(%arg0: i32) -> (i32, i32) {
    %c0_i32 = arith.constant 0 : i32
    %c0_i32_0 = arith.constant 0 : i32
    %c0_i32_1 = arith.constant 0 : i32
    return %c0_i32, %c0_i32_0 : i32, i32
  }
  func.func @transform_4(%arg0: i32) -> (i32, i32) {
    %c0_i32 = arith.constant 0 : i32
    %c0_i32_0 = arith.constant 0 : i32
    %c0_i32_1 = arith.constant 0 : i32
    return %c0_i32, %c0_i32_0 : i32, i32
  }
  func.func @transform_5(%arg0: i32) -> (i32, i32) {
    %c0_i32 = arith.constant 0 : i32
    %c0_i32_0 = arith.constant 0 : i32
    %c0_i32_1 = arith.constant 0 : i32
    return %c0_i32, %c0_i32_0 : i32, i32
  }
  func.func @transform_6(%arg0: i32) -> (i32, i32) {
    %c0_i32 = arith.constant 0 : i32
    %c0_i32_0 = arith.constant 0 : i32
    %c0_i32_1 = arith.constant 0 : i32
    return %c0_i32, %c0_i32_0 : i32, i32
  }
  func.func @transform_7(%arg0: i32) -> (i32, i32) {
    %c0_i32 = arith.constant 0 : i32
    %c0_i32_0 = arith.constant 0 : i32
    %c0_i32_1 = arith.constant 0 : i32
    return %c0_i32, %c0_i32_0 : i32, i32
  }
  func.func @transform_8(%arg0: i32) -> (i32, i32) {
    %c0_i32 = arith.constant 0 : i32
    %c0_i32_0 = arith.constant 0 : i32
    %c0_i32_1 = arith.constant 0 : i32
    return %c0_i32, %c0_i32_0 : i32, i32
  }
  func.func @transform_9(%arg0: i32) -> (i32, i32) {
    %c0_i32 = arith.constant 0 : i32
    %c0_i32_0 = arith.constant 0 : i32
    %c0_i32_1 = arith.constant 0 : i32
    return %c0_i32, %c0_i32_0 : i32, i32
  }
  func.func @transform_10(%arg0: i32) -> (i32, i32) {
    %c0_i32 = arith.constant 0 : i32
    %c0_i32_0 = arith.constant 0 : i32
    %c0_i32_1 = arith.constant 0 : i32
    return %c0_i32, %c0_i32_0 : i32, i32
  }
  func.func @transform_11(%arg0: i32) -> (i32, i32) {
    %c0_i32 = arith.constant 0 : i32
    %c0_i32_0 = arith.constant 0 : i32
    return %arg0, %c0_i32 : i32, i32
  }
}

</mosaic_0001>

<bundles_post_ra>
// kernel: lstm_predictor_forward.1
= control target key start
LH: loop header
LB: loop body
LE: loop exit
PB: predicated region body
PF: predicated region fallthrough
CT: control target
= control target key end

     0   :  { %16 = vsyncpa [#allocation3], 0  ;;  %s3469_s0 = inlined_call_operand.vmem [shape: f32[8,2,6], index: 0, kind: input, shape index: {}]   ;;  %s3470_s1 = inlined_call_operand.hbm [shape: f32[6,128], index: 1, kind: input, shape index: {}]   ;;  %s3471_s2 = inlined_call_operand.vmem [shape: bf16[32,128], index: 2, kind: input, shape index: {}]   ;;  %s3472_s3 = inlined_call_operand.vmem [shape: f32[1,128], index: 3, kind: input, shape index: {}]   ;;  %s3473_s4 = inlined_call_operand.vmem [shape: bf16[32,128], index: 4, kind: input, shape index: {}]   ;;  %s3474_s5 = inlined_call_operand.hbm [shape: bf16[32,128], index: 5, kind: input, shape index: {}]   ;;  %s3475_s6 = inlined_call_operand.hbm [shape: f32[1,128], index: 6, kind: input, shape index: {}]   ;;  %s3476_s7 = inlined_call_operand.vmem [shape: f32[32,32], index: 7, kind: input, shape index: {}]   ;;  %s3477_s8 = inlined_call_operand.hbm [shape: f32[1,32], index: 8, kind: input, shape index: {}]   ;;  %s3478_s9 = inlined_call_operand.vmem [shape: f32[32,12], index: 9, kind: input, shape index: {}]   ;;  %s3479_s10 = inlined_call_operand.vmem [shape: f32[1,12], index: 10, kind: input, shape index: {}]   ;;  %s3480_s11 = inlined_call_operand.vmem [shape: f32[2,12], index: 11, kind: output, shape index: {}]  }
   0x1   :  { %17 = vsyncpa [#allocation5], 0 }
   0x2   :  { %18 = vsyncpa [#allocation8], 0  ;;  %s2952_s17 = smov [#allocation4]  }
   0x3   :  { %s42_s18 = sshll.u32 %s2952_s17, 4  ;;  %s43_s18 = int_to_ptr.vmem [resolvable:$true] %s42_s18 }
   0x4   :  { %s2874_s19 = scalar_lea.vmem %s43_s18, 256  ;;  %p2879_p1 = scmp.lt.s32.totalorder %s43_s18, %s43_s18 }
   0x5   :  { %p2875_p0 = scmp.ne.s32.totalorder %s43_s18, %s2874_s19  ;;  %p2880_p2 = scmp.lt.s32.totalorder %s2874_s19, %s2874_s19 }
   0x7   :  { %p2881_p3 = por %p2880_p2, %p2879_p1 }
   0x9   :  { %p2882_p4 = pnand %p2881_p3, %p2875_p0 }
   0xb   :  { %2885 = shalt.err (!%p2882_p4)
}
   0xc   :  { %s2953_s20 = smov 64   ;;  %s2954_s21 = smov 4  }
   0xd   :  { %48 = dma.hbm_to_vmem [thread:$0]  %s3474_s5, 256, %s43_s18, [#allocation5], %s2953_s20, %s2953_s20, %s2954_s21  }
   0xe   :  { %s2955_s24 = smov [#allocation2]   ;;  %s2956_s26 = smov [#allocation6]  }
   0xf   :  { %s27_s25 = sshll.u32 %s2955_s24, 4  ;;  %s55_s27 = sshll.u32 %s2956_s26, 4  ;;  %s28_s25 = int_to_ptr.vmem [resolvable:$true] %s27_s25  ;;  %s56_s27 = int_to_ptr.vmem [resolvable:$true] %s55_s27 }
  0x10   :  { %s2894_s28 = scalar_lea.vmem %s28_s25, 128  ;;  %p2899_p6 = scmp.lt.s32.totalorder %s28_s25, %s28_s25 }
  0x11   :  { %p2895_p5 = scmp.ne.s32.totalorder %s28_s25, %s2894_s28  ;;  %p2900_p7 = scmp.lt.s32.totalorder %s2894_s28, %s2894_s28 }
  0x13   :  { %p2901_p8 = por %p2900_p7, %p2899_p6 }
  0x15   :  { %p2902_p9 = pnand %p2901_p8, %p2895_p5 }
  0x17   :  { %2905 = shalt.err (!%p2902_p9)
}
  0x18   :  { %30 = dma.hbm_to_vmem [thread:$0]  %s3470_s1, 128, %s28_s25, [#allocation3]  }
  0x19   :  { %s2914_s12 = scalar_lea.vmem %s56_s27, 16  ;;  %s2918_s5 = scalar_lea.vmem %s56_s27, 32 }
  0x1a   :  { %p2915_p10 = scmp.ne.s32.totalorder %s56_s27, %s2914_s12  ;;  %p2919_p11 = scmp.lt.s32.totalorder %s56_s27, %s56_s27 }
  0x1b   :  { %p2920_p12 = scmp.lt.s32.totalorder %s2918_s5, %s2914_s12 }
  0x1d   :  { %p2921_p13 = por %p2920_p12, %p2919_p11 }
  0x1f   :  { %p2922_p0 = pnand %p2921_p13, %p2915_p10 }
  0x21   :  { %2925 = shalt.err (!%p2922_p0)
}
  0x22   :  { %58 = dma.hbm_to_vmem [thread:$0]  %s3475_s6, 16, %s56_s27, [#allocation5]  }
  0x23   :  { %s2957_s15 = smov [#allocation7]  }
  0x24   :  { %s67_s16 = sshll.u32 %s2957_s15, 4  ;;  %s68_s16 = int_to_ptr.vmem [resolvable:$true] %s67_s16 }
  0x25   :  { %s2934_s17 = scalar_lea.vmem %s68_s16, 16  ;;  %s2938_s18 = scalar_lea.vmem %s68_s16, 32 }
  0x26   :  { %p2935_p1 = scmp.ne.s32.totalorder %s68_s16, %s2934_s17  ;;  %p2939_p2 = scmp.lt.s32.totalorder %s68_s16, %s68_s16 }
  0x27   :  { %p2940_p3 = scmp.lt.s32.totalorder %s2938_s18, %s2934_s17 }
  0x29   :  { %p2941_p4 = por %p2940_p3, %p2939_p2 }
  0x2b   :  { %p2942_p5 = pnand %p2941_p4, %p2935_p1 }
  0x2d   :  { %2945 = shalt.err (!%p2942_p5)
}
  0x2e   :  { %70 = dma.hbm_to_vmem [thread:$0]  %s3477_s8, 16, %s68_s16, [#allocation8]  }
  0x2f   :  { %2946 = dma.done.wait [#allocation3], 128  }
  0x30   :  { %2947 = vsyncadd [#allocation3], 4294967168 }
  0x31   :  { %2948 = dma.done.wait [#allocation5], 272  }
  0x32   :  { %2949 = vsyncadd [#allocation5], 4294967024 }
  0x33   :  { %2950 = dma.done.wait [#allocation8], 16  }
  0x34   :  { %2951 = vsyncadd [#allocation8], 4294967280  ;;  %v2958_v0 = vmov 0.0   ;;  %vm2959_vm0 = vmmov 0   ;;  %vm114_vm1 = vcmask 1045504   ;;  %vm110_vm2 = vcmask 48128  }
  0x35   :  { %2480 = vmatprep.subr.mxu0 %v2958_v0  ;;  %2482 = vmatprep.mubr.msk.f32.mxu0 %vm2959_vm0, %v2958_v0  ;;  %v3042_v1 = vld [vmem:[#allocation2] sm:$0x3f]  ;;  %v3069_v15 = vld [vmem:[%s3471_s2 + $0x8] sm:$0xff]   ;;  %s2961_s13 = smov 32   ;;  %vm297_vm3 = vcmask 261120   ;;  %vm2306_vm4 = vcmask 91136  }
  0x36   :  { %2485 = vmatprep.subr.mxu1 %v2958_v0  ;;  %2487 = vmatprep.mubr.msk.f32.mxu1 %vm2959_vm0, %v2958_v0  ;;  %v103_v2 = vld [vmem:[%s3469_s0] sm:$0x3]  ;;  %v2319_v14 = vld [vmem:[%s3469_s0 + $0x2] sm:$0x3]  ;;  %v3074_v16 = vld [vmem:[%s3473_s4 + $0x8] sm:$0xff]  }
  0x37   :  { %2481 = vmatpush3.msk.msra.mxu0 %vm114_vm1, %v3042_v1  ;;  %2486 = vmatpush3.msk.msra.mxu1 %vm114_vm1, %v3042_v1  ;;  %v3059_v3 = vld [vmem:[%s3472_s3] ss:$0 sm:$0xff]  ;;  %v3114_v27 = vld [vmem:[#allocation6] ss:$0 sm:$0xff]  ;;  %v2331_v57 = vld [vmem:[%s3469_s0 + $0x4] sm:$0x3] }
  0x38   :  { %2483 = vmatmul.mubr.msk.f32.vlgmr.msra.gmra.mxu0 %vm110_vm2, %v103_v2  ;;  %2490 = vmatprep.subr.bf16.mxu0 %v2958_v0  ;;  %v3082_v17 = vld [vmem:[%s3471_s2] sm:$0xff]   ;;  %s2960_s2 = smov 96  }
  0x39   :  { %2498 = vmatprep.subr.bf16.mxu1 %v2958_v0  ;;  %2494 = vmatprep.mubr.msk.bf16.mxu0 %vm2959_vm0, %v2958_v0  ;;  %v3087_v18 = vld [vmem:[%s3473_s4] sm:$0xff]  }
  0x3a   :  { %2488 = vmatmul.mubr.msk.f32.vlgmr.msra.gmra.mxu1 %vm110_vm2, %v2319_v14  ;;  %2491 = vmatpush3.bf16.msra.mxu0 %v3069_v15 }
  0x3b   :  { %2499 = vmatpush3.bf16.msra.mxu1 %v3074_v16  ;;  %2492 = vmatprep.subr.bf16.mxu0 %v2958_v0 }
  0x3c   :  { %2500 = vmatprep.subr.bf16.mxu1 %v2958_v0  ;;  %2502 = vmatprep.mubr.msk.bf16.mxu1 %vm2959_vm0, %v2958_v0 }
  0x3e   :  { %2493 = vmatpush3.bf16.msra.mxu0 %v3082_v17 }
  0x3f   :  { %2501 = vmatpush3.bf16.msra.mxu1 %v3087_v18  ;;  %2506 = vmatprep.subr.mxu0 %v2958_v0 }
  0x40   :  { %2511 = vmatprep.subr.bf16.mxu1 %v2958_v0 }
  0xf8   :  { %v184_v4 = vpop.f32.mrf.mxu0 }
  0xf9   :  { %v185_v5 = vadd.f32 %v3059_v3, %v184_v4 }
  0xfa   :  { %v2484_v6 = vpop.f32.mrf.mxu0  ;;  %v277_v23 = vpop.f32.mrf.mxu1 }
  0xfb   :  { %2734 = vtanh.f32 %v185_v5  ;;  %v2318_v8 = vmul.f32 -1.442695, %v185_v5  ;;  %v278_v26 = vadd.f32 %v3059_v3, %v277_v23  ;;  %v3140_v6 = vld [vmem:[#allocation4 + $0x8] sm:$0xff]  }
  0xfc   :  { %v2489_v24 = vpop.f32.mrf.mxu1 }
  0xfd   :  { %2736 = vpow2.f32 %v2318_v8  ;;  %v3145_v8 = vld [vmem:[#allocation4] sm:$0xff]  }
 0x108   :  { %v2735_v7 = vpop.eup %2734 }
 0x109   :  { %196 = vrot.lane.b32.xlu0 %v2735_v7, %s2953_s20 }
 0x10a   :  { %v2737_v9 = vpop.eup %2736 }
 0x10b   :  { %v191_v10 = vadd.f32 1.0, %v2737_v9 }
 0x10d   :  { %2738 = vrcp.f32 %v191_v10 }
 0x11a   :  { %v2739_v11 = vpop.eup %2738 }
 0x17b   :  { %v197_v12 = vpop.permute.xlu0 %196 }
 0x17c   :  { %v199_v13 = vmul.f32 %v2739_v11, %v197_v12 }
 0x17e   :  { %2740 = vtanh.f32 %v199_v13 }
 0x18b   :  { %v2741_v19 = vpop.eup %2740 }
 0x18c   :  { %202 = vrot.lane.b32.xlu0 %v2741_v19, %s2960_s2 }
 0x190   :  { %350 = vrot.lane.b32.xlu0 %v199_v13, %s2961_s13 }
 0x1fe   :  { %v203_v20 = vpop.permute.xlu0 %202 }
 0x1ff   :  { %v205_v21 = vmul.f32 %v2739_v11, %v203_v20 }
 0x201   :  { %v281_v22 = vpack.c.bf16 %v205_v21, %v205_v21 }
 0x202   :  { %v351_v46 = vpop.permute.xlu0 %350 }
 0x203   :  { %283 = vrot.lane.b32.xlu1 %v281_v22, %s2961_s13 }
 0x275   :  { %v284_v25 = vpop.permute.xlu1 %283 }
 0x276   :  { %2495 = vmatmul.mubr.msk.bf16.vlgmr.msra.gmra.mxu0 %vm297_vm3, %v284_v25  ;;  %2503 = vmatmul.mubr.msk.bf16.vlgmr.msra.gmra.mxu1 %vm297_vm3, %v284_v25 }
 0x277   :  { %2507 = vmatpush3.msk.msra.mxu0 %vm114_vm1, %v3042_v1  ;;  %2508 = vmatprep.mubr.msk.f32.mxu0 %vm2959_vm0, %v2958_v0 }
 0x278   :  { %2512 = vmatpush3.bf16.msra.mxu1 %v3069_v15  ;;  %2519 = vmatprep.subr.bf16.mxu0 %v2958_v0 }
 0x279   :  { %2513 = vmatprep.subr.bf16.mxu1 %v2958_v0  ;;  %2515 = vmatprep.mubr.msk.bf16.mxu1 %vm2959_vm0, %v2958_v0 }
 0x27c   :  { %2514 = vmatpush3.bf16.msra.mxu1 %v3082_v17 }
 0x27d   :  { %2527 = vmatprep.subr.bf16.mxu1 %v2958_v0 }
 0x27e   :  { %2509 = vmatmul.mubr.msk.f32.vlgmr.msra.gmra.mxu0 %vm110_vm2, %v2331_v57 }
 0x27f   :  { %2520 = vmatpush3.bf16.msra.mxu0 %v3074_v16  ;;  %2523 = vmatprep.mubr.msk.bf16.mxu0 %vm2959_vm0, %v2958_v0 }
 0x280   :  { %2521 = vmatprep.subr.bf16.mxu0 %v2958_v0 }
 0x283   :  { %2522 = vmatpush3.bf16.msra.mxu0 %v3087_v18 }
 0x284   :  { %2535 = vmatprep.subr.mxu0 %v2958_v0 }
 0x336   :  { %v335_v28 = vpop.f32.mrf.mxu0  ;;  %v422_v29 = vpop.f32.mrf.mxu1 }
 0x337   :  { %v341_v30 = vadd.f32 %v335_v28, %v278_v26  ;;  %v423_v31 = vadd.f32 %v3114_v27, %v422_v29 }
 0x338   :  { %v2496_v32 = vpop.f32.mrf.mxu0  ;;  %v2504_v33 = vpop.f32.mrf.mxu1 }
 0x339   :  { %2742 = vtanh.f32 %v341_v30  ;;  %v2325_v40 = vmul.f32 -1.442695, %v341_v30  ;;  %v2330_v41 = vmul.f32 -1.442695, %v423_v31 }
 0x33a   :  { %2744 = vtanh.f32 %v423_v31  ;;  %v338_v34 = vpop.f32.mrf.mxu0  ;;  %v425_v35 = vpop.f32.mrf.mxu1 }
 0x33b   :  { %2746 = vpow2.f32 %v2325_v40 }
 0x33c   :  { %v2497_v36 = vpop.f32.mrf.mxu0  ;;  %v2505_v37 = vpop.f32.mrf.mxu1  ;;  %2748 = vpow2.f32 %v2330_v41 }
 0x33e   :  { %v517_v4 = vpop.f32.mrf.mxu0 }
 0x33f   :  { %v518_v10 = vadd.f32 %v3059_v3, %v517_v4 }
 0x340   :  { %v2510_v5 = vpop.f32.mrf.mxu0 }
 0x346   :  { %v2743_v38 = vpop.eup %2742 }
 0x347   :  { %v2745_v39 = vpop.eup %2744  ;;  %355 = vrot.lane.b32.xlu1 %v2743_v38, %s2953_s20 }
 0x348   :  { %436 = vrot.lane.b32.xlu0 %v2745_v39, %s2953_s20  ;;  %v2747_v42 = vpop.eup %2746 }
 0x349   :  { %v2749_v43 = vpop.eup %2748  ;;  %v345_v44 = vadd.f32 1.0, %v2747_v42 }
 0x34a   :  { %v431_v45 = vadd.f32 1.0, %v2749_v43 }
 0x34b   :  { %2750 = vrcp.f32 %v345_v44 }
 0x34c   :  { %2752 = vrcp.f32 %v431_v45 }
 0x358   :  { %v2751_v47 = vpop.eup %2750 }
 0x359   :  { %v2753_v49 = vpop.eup %2752  ;;  %v353_v54 = vmul.f32 %v2751_v47, %v351_v46 }
 0x3b9   :  { %v356_v48 = vpop.permute.xlu1 %355 }
 0x3ba   :  { %v437_v50 = vpop.permute.xlu0 %436  ;;  %v358_v51 = vmul.f32 %v2751_v47, %v356_v48 }
 0x3bb   :  { %v3119_v52 = vmul.f32 %v2753_v49, %v437_v50 }
 0x3bc   :  { %360 = vrot.lane.b32.xlu1 %v358_v51, %s2961_s13 }
 0x3bd   :  { %2754 = vtanh.f32 %v3119_v52 }
 0x3ca   :  { %v2755_v53 = vpop.eup %2754 }
 0x3cb   :  { %442 = vrot.lane.b32.xlu0 %v2755_v53, %s2960_s2  ;;  %v2341_v53 = vld [vmem:[%s3469_s0 + $0x6] sm:$0x3] }
 0x42e   :  { %v361_v55 = vpop.permute.xlu1 %360 }
 0x42f   :  { %v3124_v56 = vadd.f32 %v361_v55, %v353_v54 }
 0x431   :  { %2756 = vtanh.f32 %v3124_v56 }
 0x43d   :  { %v443_v58 = vpop.permute.xlu0 %442 }
 0x43e   :  { %v2757_v59 = vpop.eup %2756  ;;  %v445_v60 = vmul.f32 %v2753_v49, %v443_v58 }
 0x43f   :  { %366 = vrot.lane.b32.xlu1 %v2757_v59, %s2953_s20 }
 0x440   :  { %v633_v61 = vpack.c.bf16 %v445_v60, %v445_v60 }
 0x442   :  { %635 = vrot.lane.b32.xlu0 %v633_v61, %s2961_s13 }
 0x4b1   :  { %v367_v62 = vpop.permute.xlu1 %366 }
 0x4b2   :  { %v369_v63 = vmul.f32 %v2751_v47, %v367_v62 }
 0x4b4   :  { %v521_v2 = vpack.c.bf16 %v369_v63, %v369_v63  ;;  %v636_v9 = vpop.permute.xlu0 %635 }
 0x4b6   :  { %523 = vrot.lane.b32.xlu1 %v521_v2, %s2961_s13 }
 0x528   :  { %v524_v7 = vpop.permute.xlu1 %523 }
 0x529   :  { %2516 = vmatmul.mubr.msk.bf16.vlgmr.msra.gmra.mxu1 %vm297_vm3, %v524_v7  ;;  %2524 = vmatmul.mubr.msk.bf16.vlgmr.msra.gmra.mxu0 %vm297_vm3, %v524_v7 }
 0x52a   :  { %2528 = vmatpush3.bf16.msra.mxu1 %v3140_v6  ;;  %2531 = vmatprep.mubr.msk.bf16.mxu1 %vm2959_vm0, %v2958_v0 }
 0x52b   :  { %2529 = vmatprep.subr.bf16.mxu1 %v2958_v0  ;;  %2536 = vmatpush3.msk.msra.mxu0 %vm114_vm1, %v3042_v1 }
 0x52c   :  { %2537 = vmatprep.mubr.msk.f32.mxu0 %vm2959_vm0, %v2958_v0  ;;  %2548 = vmatprep.subr.bf16.mxu0 %v2958_v0 }
 0x52e   :  { %2530 = vmatpush3.bf16.msra.mxu1 %v3145_v8 }
 0x52f   :  { %2540 = vmatprep.subr.bf16.mxu1 %v2958_v0 }
 0x531   :  { %2532 = vmatmul.mubr.msk.bf16.vlgmr.msra.gmra.mxu1 %vm297_vm3, %v636_v9  ;;  %2538 = vmatmul.mubr.msk.f32.vlgmr.msra.gmra.mxu0 %vm110_vm2, %v2341_v53 }
 0x532   :  { %2541 = vmatpush3.bf16.msra.mxu1 %v3069_v15  ;;  %2544 = vmatprep.mubr.msk.bf16.mxu1 %vm2959_vm0, %v2958_v0 }
 0x533   :  { %2542 = vmatprep.subr.bf16.mxu1 %v2958_v0  ;;  %2549 = vmatpush3.bf16.msra.mxu0 %v3074_v16 }
 0x534   :  { %2552 = vmatprep.mubr.msk.bf16.mxu0 %vm2959_vm0, %v2958_v0  ;;  %2550 = vmatprep.subr.bf16.mxu0 %v2958_v0 }
 0x536   :  { %2543 = vmatpush3.bf16.msra.mxu1 %v3082_v17 }
 0x537   :  { %2556 = vmatprep.subr.bf16.mxu1 %v2958_v0  ;;  %2551 = vmatpush3.bf16.msra.mxu0 %v3087_v18 }
 0x538   :  { %2564 = vmatprep.subr.mxu0 %v2958_v0 }
 0x5e9   :  { %v562_v11 = vpop.f32.mrf.mxu1  ;;  %v627_v12 = vpop.f32.mrf.mxu0 }
 0x5ea   :  { %v568_v13 = vadd.f32 %v562_v11, %v518_v10  ;;  %v628_v24 = vadd.f32 %v3114_v27, %v627_v12 }
 0x5eb   :  { %v2517_v14 = vpop.f32.mrf.mxu1  ;;  %v2525_v19 = vpop.f32.mrf.mxu0 }
 0x5ec   :  { %2758 = vtanh.f32 %v568_v13  ;;  %v2335_v33 = vmul.f32 -1.442695, %v568_v13 }
 0x5ed   :  { %v565_v20 = vpop.f32.mrf.mxu1  ;;  %v630_v21 = vpop.f32.mrf.mxu0 }
 0x5ef   :  { %v2518_v22 = vpop.f32.mrf.mxu1  ;;  %v2526_v23 = vpop.f32.mrf.mxu0 }
 0x5f1   :  { %v686_v25 = vpop.f32.mrf.mxu1  ;;  %v792_v61 = vpop.f32.mrf.mxu0 }
 0x5f2   :  { %v692_v26 = vadd.f32 %v686_v25, %v628_v24  ;;  %v793_v4 = vadd.f32 %v3059_v3, %v792_v61 }
 0x5f3   :  { %v2533_v28 = vpop.f32.mrf.mxu1  ;;  %v2539_v62 = vpop.f32.mrf.mxu0 }
 0x5f4   :  { %2760 = vtanh.f32 %v692_v26  ;;  %v2340_v34 = vmul.f32 -1.442695, %v692_v26 }
 0x5f5   :  { %v689_v29 = vpop.f32.mrf.mxu1  ;;  %2762 = vpow2.f32 %v2335_v33 }
 0x5f6   :  { %2764 = vpow2.f32 %v2340_v34 }
 0x5f7   :  { %v2534_v30 = vpop.f32.mrf.mxu1 }
 0x5f9   :  { %v2759_v31 = vpop.eup %2758 }
 0x5fa   :  { %578 = vrot.lane.b32.xlu1 %v2759_v31, %s2953_s20 }
 0x601   :  { %v2761_v32 = vpop.eup %2760 }
 0x602   :  { %706 = vrot.lane.b32.xlu0 %v2761_v32, %s2953_s20  ;;  %v2763_v35 = vpop.eup %2762 }
 0x603   :  { %v572_v36 = vadd.f32 1.0, %v2763_v35  ;;  %v2765_v37 = vpop.eup %2764 }
 0x604   :  { %v696_v38 = vadd.f32 1.0, %v2765_v37 }
 0x605   :  { %2766 = vrcp.f32 %v572_v36 }
 0x606   :  { %701 = vrot.lane.b32.xlu0 %v3119_v52, %s2961_s13  ;;  %2768 = vrcp.f32 %v696_v38 }
 0x612   :  { %v2767_v39 = vpop.eup %2766 }
 0x613   :  { %v2769_v42 = vpop.eup %2768  ;;  %v576_v45 = vmul.f32 %v2767_v39, %v3124_v56 }
 0x66c   :  { %v579_v40 = vpop.permute.xlu1 %578 }
 0x66d   :  { %v581_v41 = vmul.f32 %v2767_v39, %v579_v40 }
 0x66f   :  { %583 = vrot.lane.b32.xlu1 %v581_v41, %s2961_s13 }
 0x674   :  { %v707_v43 = vpop.permute.xlu0 %706 }
 0x675   :  { %v709_v44 = vmul.f32 %v2769_v42, %v707_v43 }
 0x677   :  { %711 = vrot.lane.b32.xlu1 %v709_v44, %s2961_s13 }
 0x678   :  { %v702_v48 = vpop.permute.xlu0 %701 }
 0x679   :  { %v704_v49 = vmul.f32 %v2769_v42, %v702_v48 }
 0x6e1   :  { %v584_v46 = vpop.permute.xlu1 %583 }
 0x6e2   :  { %v3173_v47 = vadd.f32 %v584_v46, %v576_v45 }
 0x6e4   :  { %2770 = vtanh.f32 %v3173_v47 }
 0x6e9   :  { %v712_v50 = vpop.permute.xlu1 %711 }
 0x6ea   :  { %v3176_v51 = vadd.f32 %v712_v50, %v704_v49  ;;  %v2349_v49 = vld [vmem:[%s3469_s0 + $0x8] sm:$0x3] }
 0x6ec   :  { %2772 = vtanh.f32 %v3176_v51 }
 0x6f1   :  { %v2771_v52 = vpop.eup %2770 }
 0x6f2   :  { %589 = vrot.lane.b32.xlu0 %v2771_v52, %s2953_s20 }
 0x6f9   :  { %v2773_v54 = vpop.eup %2772 }
 0x6fa   :  { %717 = vrot.lane.b32.xlu1 %v2773_v54, %s2953_s20 }
 0x764   :  { %v590_v55 = vpop.permute.xlu0 %589 }
 0x765   :  { %v592_v56 = vmul.f32 %v2767_v39, %v590_v55 }
 0x767   :  { %v796_v57 = vpack.c.bf16 %v592_v56, %v592_v56 }
 0x769   :  { %798 = vrot.lane.b32.xlu0 %v796_v57, %s2961_s13 }
 0x76c   :  { %v718_v58 = vpop.permute.xlu1 %717 }
 0x76d   :  { %v720_v59 = vmul.f32 %v2769_v42, %v718_v58 }
 0x76f   :  { %v908_v60 = vpack.c.bf16 %v720_v59, %v720_v59 }
 0x771   :  { %910 = vrot.lane.b32.xlu1 %v908_v60, %s2961_s13 }
 0x7db   :  { %v799_v63 = vpop.permute.xlu0 %798 }
 0x7dc   :  { %2545 = vmatmul.mubr.msk.bf16.vlgmr.msra.gmra.mxu1 %vm297_vm3, %v799_v63  ;;  %2553 = vmatmul.mubr.msk.bf16.vlgmr.msra.gmra.mxu0 %vm297_vm3, %v799_v63 }
 0x7dd   :  { %2557 = vmatpush3.bf16.msra.mxu1 %v3140_v6  ;;  %2560 = vmatprep.mubr.msk.bf16.mxu1 %vm2959_vm0, %v2958_v0 }
 0x7de   :  { %2558 = vmatprep.subr.bf16.mxu1 %v2958_v0  ;;  %2565 = vmatpush3.msk.msra.mxu0 %vm114_vm1, %v3042_v1 }
 0x7df   :  { %2566 = vmatprep.mubr.msk.f32.mxu0 %vm2959_vm0, %v2958_v0  ;;  %2577 = vmatprep.subr.bf16.mxu0 %v2958_v0 }
 0x7e1   :  { %2559 = vmatpush3.bf16.msra.mxu1 %v3145_v8 }
 0x7e2   :  { %2569 = vmatprep.subr.bf16.mxu1 %v2958_v0 }
 0x7e3   :  { %v911_v2 = vpop.permute.xlu1 %910 }
 0x7e4   :  { %2561 = vmatmul.mubr.msk.bf16.vlgmr.msra.gmra.mxu1 %vm297_vm3, %v911_v2  ;;  %2567 = vmatmul.mubr.msk.f32.vlgmr.msra.gmra.mxu0 %vm110_vm2, %v2349_v49 }
 0x7e5   :  { %2570 = vmatpush3.bf16.msra.mxu1 %v3069_v15  ;;  %2573 = vmatprep.mubr.msk.bf16.mxu1 %vm2959_vm0, %v2958_v0 }
 0x7e6   :  { %2571 = vmatprep.subr.bf16.mxu1 %v2958_v0  ;;  %2578 = vmatpush3.bf16.msra.mxu0 %v3074_v16 }
 0x7e7   :  { %2581 = vmatprep.mubr.msk.bf16.mxu0 %vm2959_vm0, %v2958_v0  ;;  %2579 = vmatprep.subr.bf16.mxu0 %v2958_v0 }
 0x7e9   :  { %2572 = vmatpush3.bf16.msra.mxu1 %v3082_v17 }
 0x7ea   :  { %2585 = vmatprep.subr.bf16.mxu1 %v2958_v0  ;;  %2580 = vmatpush3.bf16.msra.mxu0 %v3087_v18 }
 0x7eb   :  { %2593 = vmatprep.subr.mxu0 %v2958_v0 }
 0x89c   :  { %v837_v5 = vpop.f32.mrf.mxu1  ;;  %v902_v7 = vpop.f32.mrf.mxu0 }
 0x89d   :  { %v843_v9 = vadd.f32 %v837_v5, %v793_v4  ;;  %v903_v20 = vadd.f32 %v3114_v27, %v902_v7 }
 0x89e   :  { %v2546_v10 = vpop.f32.mrf.mxu1  ;;  %v2554_v11 = vpop.f32.mrf.mxu0 }
 0x89f   :  { %2774 = vtanh.f32 %v843_v9  ;;  %v2345_v29 = vmul.f32 -1.442695, %v843_v9 }
 0x8a0   :  { %v840_v12 = vpop.f32.mrf.mxu1  ;;  %v905_v13 = vpop.f32.mrf.mxu0 }
 0x8a2   :  { %v2547_v14 = vpop.f32.mrf.mxu1  ;;  %v2555_v19 = vpop.f32.mrf.mxu0 }
 0x8a4   :  { %v949_v21 = vpop.f32.mrf.mxu1  ;;  %v1051_v56 = vpop.f32.mrf.mxu0 }
 0x8a5   :  { %v955_v22 = vadd.f32 %v949_v21, %v903_v20  ;;  %v1052_v60 = vadd.f32 %v3059_v3, %v1051_v56 }
 0x8a6   :  { %v2562_v23 = vpop.f32.mrf.mxu1  ;;  %v2568_v57 = vpop.f32.mrf.mxu0 }
 0x8a7   :  { %2776 = vtanh.f32 %v955_v22  ;;  %v2348_v30 = vmul.f32 -1.442695, %v955_v22 }
 0x8a8   :  { %v952_v24 = vpop.f32.mrf.mxu1  ;;  %2778 = vpow2.f32 %v2345_v29 }
 0x8a9   :  { %2780 = vpow2.f32 %v2348_v30 }
 0x8aa   :  { %v2563_v25 = vpop.f32.mrf.mxu1 }
 0x8ac   :  { %v2775_v26 = vpop.eup %2774 }
 0x8ad   :  { %853 = vrot.lane.b32.xlu0 %v2775_v26, %s2953_s20 }
 0x8b4   :  { %v2777_v28 = vpop.eup %2776 }
 0x8b5   :  { %965 = vrot.lane.b32.xlu1 %v2777_v28, %s2953_s20  ;;  %v2779_v31 = vpop.eup %2778 }
 0x8b6   :  { %v847_v32 = vadd.f32 1.0, %v2779_v31  ;;  %v2781_v33 = vpop.eup %2780 }
 0x8b7   :  { %v959_v34 = vadd.f32 1.0, %v2781_v33 }
 0x8b8   :  { %2782 = vrcp.f32 %v847_v32 }
 0x8b9   :  { %2784 = vrcp.f32 %v959_v34 }
 0x8c5   :  { %v2783_v35 = vpop.eup %2782 }
 0x8c6   :  { %v2785_v38 = vpop.eup %2784  ;;  %v851_v41 = vmul.f32 %v2783_v35, %v3173_v47 }
 0x8c7   :  { %v963_v44 = vmul.f32 %v2785_v38, %v3176_v51 }
 0x91f   :  { %v854_v36 = vpop.permute.xlu0 %853 }
 0x920   :  { %v856_v37 = vmul.f32 %v2783_v35, %v854_v36 }
 0x922   :  { %858 = vrot.lane.b32.xlu0 %v856_v37, %s2961_s13 }
 0x927   :  { %v966_v39 = vpop.permute.xlu1 %965 }
 0x928   :  { %v968_v40 = vmul.f32 %v2785_v38, %v966_v39 }
 0x92a   :  { %970 = vrot.lane.b32.xlu1 %v968_v40, %s2961_s13 }
 0x994   :  { %v859_v42 = vpop.permute.xlu0 %858 }
 0x995   :  { %v3220_v43 = vadd.f32 %v859_v42, %v851_v41 }
 0x997   :  { %2786 = vtanh.f32 %v3220_v43 }
 0x99c   :  { %v971_v45 = vpop.permute.xlu1 %970 }
 0x99d   :  { %v3224_v46 = vadd.f32 %v971_v45, %v963_v44  ;;  %v2357_v44 = vld [vmem:[%s3469_s0 + $0xa] sm:$0x3] }
 0x99f   :  { %2788 = vtanh.f32 %v3224_v46 }
 0x9a4   :  { %v2787_v48 = vpop.eup %2786 }
 0x9a5   :  { %864 = vrot.lane.b32.xlu0 %v2787_v48, %s2953_s20 }
 0x9ac   :  { %v2789_v47 = vpop.eup %2788 }
 0x9ad   :  { %976 = vrot.lane.b32.xlu1 %v2789_v47, %s2953_s20 }
 0xa17   :  { %v865_v50 = vpop.permute.xlu0 %864 }
 0xa18   :  { %v867_v51 = vmul.f32 %v2783_v35, %v865_v50 }
 0xa1a   :  { %v1055_v52 = vpack.c.bf16 %v867_v51, %v867_v51 }
 0xa1c   :  { %1057 = vrot.lane.b32.xlu0 %v1055_v52, %s2961_s13 }
 0xa1f   :  { %v977_v53 = vpop.permute.xlu1 %976 }
 0xa20   :  { %v979_v54 = vmul.f32 %v2785_v38, %v977_v53 }
 0xa22   :  { %v1167_v55 = vpack.c.bf16 %v979_v54, %v979_v54 }
 0xa24   :  { %1169 = vrot.lane.b32.xlu1 %v1167_v55, %s2961_s13 }
 0xa8e   :  { %v1058_v58 = vpop.permute.xlu0 %1057 }
 0xa8f   :  { %2574 = vmatmul.mubr.msk.bf16.vlgmr.msra.gmra.mxu1 %vm297_vm3, %v1058_v58  ;;  %2582 = vmatmul.mubr.msk.bf16.vlgmr.msra.gmra.mxu0 %vm297_vm3, %v1058_v58 }
 0xa90   :  { %2586 = vmatpush3.bf16.msra.mxu1 %v3140_v6  ;;  %2589 = vmatprep.mubr.msk.bf16.mxu1 %vm2959_vm0, %v2958_v0 }
 0xa91   :  { %2587 = vmatprep.subr.bf16.mxu1 %v2958_v0  ;;  %2594 = vmatpush3.msk.msra.mxu0 %vm114_vm1, %v3042_v1 }
 0xa92   :  { %2595 = vmatprep.mubr.msk.f32.mxu0 %vm2959_vm0, %v2958_v0  ;;  %2606 = vmatprep.subr.bf16.mxu0 %v2958_v0 }
 0xa94   :  { %2588 = vmatpush3.bf16.msra.mxu1 %v3145_v8 }
 0xa95   :  { %2598 = vmatprep.subr.bf16.mxu1 %v2958_v0 }
 0xa96   :  { %v1170_v59 = vpop.permute.xlu1 %1169 }
 0xa97   :  { %2590 = vmatmul.mubr.msk.bf16.vlgmr.msra.gmra.mxu1 %vm297_vm3, %v1170_v59  ;;  %2596 = vmatmul.mubr.msk.f32.vlgmr.msra.gmra.mxu0 %vm110_vm2, %v2357_v44 }
 0xa98   :  { %2599 = vmatpush3.bf16.msra.mxu1 %v3069_v15  ;;  %2602 = vmatprep.mubr.msk.bf16.mxu1 %vm2959_vm0, %v2958_v0 }
 0xa99   :  { %2600 = vmatprep.subr.bf16.mxu1 %v2958_v0  ;;  %2607 = vmatpush3.bf16.msra.mxu0 %v3074_v16 }
 0xa9a   :  { %2610 = vmatprep.mubr.msk.bf16.mxu0 %vm2959_vm0, %v2958_v0  ;;  %2608 = vmatprep.subr.bf16.mxu0 %v2958_v0 }
 0xa9c   :  { %2601 = vmatpush3.bf16.msra.mxu1 %v3082_v17 }
 0xa9d   :  { %2614 = vmatprep.subr.bf16.mxu1 %v2958_v0  ;;  %2609 = vmatpush3.bf16.msra.mxu0 %v3087_v18 }
 0xa9e   :  { %2622 = vmatprep.subr.mxu0 %v2958_v0 }
 0xb4f   :  { %v1096_v61 = vpop.f32.mrf.mxu1  ;;  %v1161_v62 = vpop.f32.mrf.mxu0 }
 0xb50   :  { %v1102_v63 = vadd.f32 %v1096_v61, %v1052_v60  ;;  %v1162_v11 = vadd.f32 %v3114_v27, %v1161_v62 }
 0xb51   :  { %v2575_v2 = vpop.f32.mrf.mxu1  ;;  %v2583_v4 = vpop.f32.mrf.mxu0 }
 0xb52   :  { %2790 = vtanh.f32 %v1102_v63  ;;  %v2353_v23 = vmul.f32 -1.442695, %v1102_v63 }
 0xb53   :  { %v1099_v5 = vpop.f32.mrf.mxu1  ;;  %v1164_v7 = vpop.f32.mrf.mxu0 }
 0xb55   :  { %v2576_v9 = vpop.f32.mrf.mxu1  ;;  %v2584_v10 = vpop.f32.mrf.mxu0 }
 0xb57   :  { %v1208_v12 = vpop.f32.mrf.mxu1  ;;  %v1310_v51 = vpop.f32.mrf.mxu0 }
 0xb58   :  { %v1214_v13 = vadd.f32 %v1208_v12, %v1162_v11  ;;  %v1311_v55 = vadd.f32 %v3059_v3, %v1310_v51 }
 0xb59   :  { %v2591_v14 = vpop.f32.mrf.mxu1  ;;  %v2597_v52 = vpop.f32.mrf.mxu0 }
 0xb5a   :  { %2792 = vtanh.f32 %v1214_v13  ;;  %v2356_v24 = vmul.f32 -1.442695, %v1214_v13 }
 0xb5b   :  { %v1211_v19 = vpop.f32.mrf.mxu1  ;;  %2794 = vpow2.f32 %v2353_v23 }
 0xb5c   :  { %2796 = vpow2.f32 %v2356_v24 }
 0xb5d   :  { %v2592_v20 = vpop.f32.mrf.mxu1 }
 0xb5f   :  { %v2791_v21 = vpop.eup %2790 }
 0xb60   :  { %1112 = vrot.lane.b32.xlu0 %v2791_v21, %s2953_s20 }
 0xb67   :  { %v2793_v22 = vpop.eup %2792 }
 0xb68   :  { %1224 = vrot.lane.b32.xlu1 %v2793_v22, %s2953_s20  ;;  %v2795_v25 = vpop.eup %2794 }
 0xb69   :  { %v1106_v26 = vadd.f32 1.0, %v2795_v25  ;;  %v2797_v28 = vpop.eup %2796 }
 0xb6a   :  { %v1218_v29 = vadd.f32 1.0, %v2797_v28 }
 0xb6b   :  { %2798 = vrcp.f32 %v1106_v26 }
 0xb6c   :  { %2800 = vrcp.f32 %v1218_v29 }
 0xb78   :  { %v2799_v30 = vpop.eup %2798 }
 0xb79   :  { %v2801_v33 = vpop.eup %2800  ;;  %v1110_v36 = vmul.f32 %v2799_v30, %v3220_v43 }
 0xb7a   :  { %v1222_v39 = vmul.f32 %v2801_v33, %v3224_v46 }
 0xbd2   :  { %v1113_v31 = vpop.permute.xlu0 %1112 }
 0xbd3   :  { %v1115_v32 = vmul.f32 %v2799_v30, %v1113_v31 }
 0xbd5   :  { %1117 = vrot.lane.b32.xlu0 %v1115_v32, %s2961_s13 }
 0xbda   :  { %v1225_v34 = vpop.permute.xlu1 %1224 }
 0xbdb   :  { %v1227_v35 = vmul.f32 %v2801_v33, %v1225_v34 }
 0xbdd   :  { %1229 = vrot.lane.b32.xlu1 %v1227_v35, %s2961_s13 }
 0xc47   :  { %v1118_v37 = vpop.permute.xlu0 %1117 }
 0xc48   :  { %v3268_v38 = vadd.f32 %v1118_v37, %v1110_v36 }
 0xc4a   :  { %2802 = vtanh.f32 %v3268_v38 }
 0xc4f   :  { %v1230_v40 = vpop.permute.xlu1 %1229 }
 0xc50   :  { %v3272_v41 = vadd.f32 %v1230_v40, %v1222_v39  ;;  %v2365_v39 = vld [vmem:[%s3469_s0 + $0xc] sm:$0x3] }
 0xc52   :  { %2804 = vtanh.f32 %v3272_v41 }
 0xc57   :  { %v2803_v42 = vpop.eup %2802 }
 0xc58   :  { %1123 = vrot.lane.b32.xlu0 %v2803_v42, %s2953_s20 }
 0xc5f   :  { %v2805_v43 = vpop.eup %2804 }
 0xc60   :  { %1235 = vrot.lane.b32.xlu1 %v2805_v43, %s2953_s20 }
 0xcca   :  { %v1124_v45 = vpop.permute.xlu0 %1123 }
 0xccb   :  { %v1126_v46 = vmul.f32 %v2799_v30, %v1124_v45 }
 0xccd   :  { %v1314_v48 = vpack.c.bf16 %v1126_v46, %v1126_v46 }
 0xccf   :  { %1316 = vrot.lane.b32.xlu0 %v1314_v48, %s2961_s13 }
 0xcd2   :  { %v1236_v49 = vpop.permute.xlu1 %1235 }
 0xcd3   :  { %v1238_v47 = vmul.f32 %v2801_v33, %v1236_v49 }
 0xcd5   :  { %v1426_v50 = vpack.c.bf16 %v1238_v47, %v1238_v47 }
 0xcd7   :  { %1428 = vrot.lane.b32.xlu1 %v1426_v50, %s2961_s13 }
 0xd41   :  { %v1317_v53 = vpop.permute.xlu0 %1316 }
 0xd42   :  { %2603 = vmatmul.mubr.msk.bf16.vlgmr.msra.gmra.mxu1 %vm297_vm3, %v1317_v53  ;;  %2611 = vmatmul.mubr.msk.bf16.vlgmr.msra.gmra.mxu0 %vm297_vm3, %v1317_v53 }
 0xd43   :  { %2615 = vmatpush3.bf16.msra.mxu1 %v3140_v6  ;;  %2618 = vmatprep.mubr.msk.bf16.mxu1 %vm2959_vm0, %v2958_v0 }
 0xd44   :  { %2616 = vmatprep.subr.bf16.mxu1 %v2958_v0  ;;  %2623 = vmatpush3.msk.msra.mxu0 %vm114_vm1, %v3042_v1 }
 0xd45   :  { %2624 = vmatprep.mubr.msk.f32.mxu0 %vm2959_vm0, %v2958_v0  ;;  %2635 = vmatprep.subr.bf16.mxu0 %v2958_v0 }
 0xd47   :  { %2617 = vmatpush3.bf16.msra.mxu1 %v3145_v8 }
 0xd48   :  { %2627 = vmatprep.subr.bf16.mxu1 %v2958_v0 }
 0xd49   :  { %v1429_v54 = vpop.permute.xlu1 %1428 }
 0xd4a   :  { %2619 = vmatmul.mubr.msk.bf16.vlgmr.msra.gmra.mxu1 %vm297_vm3, %v1429_v54  ;;  %2625 = vmatmul.mubr.msk.f32.vlgmr.msra.gmra.mxu0 %vm110_vm2, %v2365_v39 }
 0xd4b   :  { %2628 = vmatpush3.bf16.msra.mxu1 %v3069_v15  ;;  %2631 = vmatprep.mubr.msk.bf16.mxu1 %vm2959_vm0, %v2958_v0 }
 0xd4c   :  { %2629 = vmatprep.subr.bf16.mxu1 %v2958_v0  ;;  %2636 = vmatpush3.bf16.msra.mxu0 %v3074_v16 }
 0xd4d   :  { %2639 = vmatprep.mubr.msk.bf16.mxu0 %vm2959_vm0, %v2958_v0  ;;  %2637 = vmatprep.subr.bf16.mxu0 %v2958_v0 }
 0xd4f   :  { %2630 = vmatpush3.bf16.msra.mxu1 %v3082_v17 }
 0xd50   :  { %2643 = vmatprep.subr.bf16.mxu1 %v2958_v0  ;;  %2638 = vmatpush3.bf16.msra.mxu0 %v3087_v18 }
 0xd51   :  { %2651 = vmatprep.subr.mxu0 %v2958_v0 }
 0xe02   :  { %v1355_v56 = vpop.f32.mrf.mxu1  ;;  %v1420_v57 = vpop.f32.mrf.mxu0 }
 0xe03   :  { %v1361_v58 = vadd.f32 %v1355_v56, %v1311_v55  ;;  %v1421_v4 = vadd.f32 %v3114_v27, %v1420_v57 }
 0xe04   :  { %v2604_v59 = vpop.f32.mrf.mxu1  ;;  %v2612_v60 = vpop.f32.mrf.mxu0 }
 0xe05   :  { %2806 = vtanh.f32 %v1361_v58  ;;  %v2361_v14 = vmul.f32 -1.442695, %v1361_v58 }
 0xe06   :  { %v1358_v61 = vpop.f32.mrf.mxu1  ;;  %v1423_v62 = vpop.f32.mrf.mxu0 }
 0xe08   :  { %v2605_v63 = vpop.f32.mrf.mxu1  ;;  %v2613_v2 = vpop.f32.mrf.mxu0 }
 0xe0a   :  { %v1467_v5 = vpop.f32.mrf.mxu1  ;;  %v1569_v45 = vpop.f32.mrf.mxu0 }
 0xe0b   :  { %v1473_v7 = vadd.f32 %v1467_v5, %v1421_v4 }
 0xe0c   :  { %v2620_v9 = vpop.f32.mrf.mxu1  ;;  %v2626_v46 = vpop.f32.mrf.mxu0 }
 0xe0d   :  { %2808 = vtanh.f32 %v1473_v7  ;;  %v2364_v19 = vmul.f32 -1.442695, %v1473_v7 }
 0xe0e   :  { %v1470_v10 = vpop.f32.mrf.mxu1  ;;  %2810 = vpow2.f32 %v2361_v14 }
 0xe0f   :  { %2812 = vpow2.f32 %v2364_v19 }
 0xe10   :  { %v2621_v11 = vpop.f32.mrf.mxu1 }
 0xe12   :  { %v2807_v12 = vpop.eup %2806 }
 0xe13   :  { %1371 = vrot.lane.b32.xlu0 %v2807_v12, %s2953_s20 }
 0xe1a   :  { %v2809_v13 = vpop.eup %2808 }
 0xe1b   :  { %1483 = vrot.lane.b32.xlu1 %v2809_v13, %s2953_s20  ;;  %v2811_v20 = vpop.eup %2810 }
 0xe1c   :  { %v1365_v21 = vadd.f32 1.0, %v2811_v20  ;;  %v2813_v22 = vpop.eup %2812 }
 0xe1d   :  { %v1477_v23 = vadd.f32 1.0, %v2813_v22 }
 0xe1e   :  { %2814 = vrcp.f32 %v1365_v21 }
 0xe1f   :  { %2816 = vrcp.f32 %v1477_v23 }
 0xe2b   :  { %v2815_v24 = vpop.eup %2814 }
 0xe2c   :  { %v2817_v28 = vpop.eup %2816  ;;  %v1369_v31 = vmul.f32 %v2815_v24, %v3268_v38 }
 0xe2d   :  { %v1481_v34 = vmul.f32 %v2817_v28, %v3272_v41 }
 0xe85   :  { %v1372_v25 = vpop.permute.xlu0 %1371 }
 0xe86   :  { %v1374_v26 = vmul.f32 %v2815_v24, %v1372_v25  ;;  %v2373_v25 = vld [vmem:[%s3469_s0 + $0xe] sm:$0x3] }
 0xe88   :  { %1376 = vrot.lane.b32.xlu0 %v1374_v26, %s2961_s13  ;;  %v2862_v26 = vld [vmem:[%s3473_s4 + $0x8] sm:$0xff]  }
 0xe8d   :  { %v1484_v29 = vpop.permute.xlu1 %1483 }
 0xe8e   :  { %v1486_v30 = vmul.f32 %v2817_v28, %v1484_v29 }
 0xe90   :  { %1488 = vrot.lane.b32.xlu1 %v1486_v30, %s2961_s13 }
 0xefa   :  { %v1377_v32 = vpop.permute.xlu0 %1376 }
 0xefb   :  { %v3316_v33 = vadd.f32 %v1377_v32, %v1369_v31 }
 0xefd   :  { %2818 = vtanh.f32 %v3316_v33 }
 0xf02   :  { %v1489_v35 = vpop.permute.xlu1 %1488 }
 0xf03   :  { %v3320_v36 = vadd.f32 %v1489_v35, %v1481_v34 }
 0xf05   :  { %2820 = vtanh.f32 %v3320_v36 }
 0xf0a   :  { %v2819_v37 = vpop.eup %2818 }
 0xf0b   :  { %1382 = vrot.lane.b32.xlu0 %v2819_v37, %s2953_s20 }
 0xf12   :  { %v2821_v38 = vpop.eup %2820 }
 0xf13   :  { %1494 = vrot.lane.b32.xlu1 %v2821_v38, %s2953_s20 }
 0xf7d   :  { %v1383_v40 = vpop.permute.xlu0 %1382 }
 0xf7e   :  { %v1385_v41 = vmul.f32 %v2815_v24, %v1383_v40  ;;  %v2864_v40 = vld [vmem:[%s3472_s3] ss:$0 sm:$0xff] }
 0xf80   :  { %v1573_v42 = vpack.c.bf16 %v1385_v41, %v1385_v41 }
 0xf82   :  { %1575 = vrot.lane.b32.xlu0 %v1573_v42, %s2961_s13 }
 0xf85   :  { %v1495_v44 = vpop.permute.xlu1 %1494 }
 0xf86   :  { %v1497_v43 = vmul.f32 %v2817_v28, %v1495_v44  ;;  %v2863_v28 = vld [vmem:[%s3473_s4] sm:$0xff]  }
 0xf88   :  { %v1685_v16 = vpack.c.bf16 %v1497_v43, %v1497_v43 }
 0xf8a   :  { %1687 = vrot.lane.b32.xlu1 %v1685_v16, %s2961_s13 }
 0xff4   :  { %v1576_v48 = vpop.permute.xlu0 %1575 }
 0xff5   :  { %2632 = vmatmul.mubr.msk.bf16.vlgmr.msra.gmra.mxu1 %vm297_vm3, %v1576_v48  ;;  %2640 = vmatmul.mubr.msk.bf16.vlgmr.msra.gmra.mxu0 %vm297_vm3, %v1576_v48 }
 0xff6   :  { %2644 = vmatpush3.bf16.msra.mxu1 %v3140_v6  ;;  %2647 = vmatprep.mubr.msk.bf16.mxu1 %vm2959_vm0, %v2958_v0 }
 0xff7   :  { %2645 = vmatprep.subr.bf16.mxu1 %v2958_v0  ;;  %2652 = vmatpush3.msk.msra.mxu0 %vm114_vm1, %v3042_v1  ;;  %v1570_v1 = vadd.f32 %v3059_v3, %v1569_v45 }
 0xff8   :  { %2653 = vmatprep.mubr.msk.f32.mxu0 %vm2959_vm0, %v2958_v0  ;;  %2664 = vmatprep.subr.bf16.mxu0 %v2958_v0 }
 0xffa   :  { %2646 = vmatpush3.bf16.msra.mxu1 %v3145_v8 }
 0xffb   :  { %2656 = vmatprep.subr.bf16.mxu1 %v2958_v0 }
 0xffc   :  { %v1688_v18 = vpop.permute.xlu1 %1687 }
 0xffd   :  { %2648 = vmatmul.mubr.msk.bf16.vlgmr.msra.gmra.mxu1 %vm297_vm3, %v1688_v18  ;;  %2654 = vmatmul.mubr.msk.f32.vlgmr.msra.gmra.mxu0 %vm110_vm2, %v2373_v25 }
 0xffe   :  { %2657 = vmatpush3.bf16.msra.mxu1 %v3069_v15  ;;  %2660 = vmatprep.mubr.msk.bf16.mxu1 %vm2959_vm0, %v2958_v0 }
 0xfff   :  { %2658 = vmatprep.subr.bf16.mxu1 %v2958_v0  ;;  %2665 = vmatpush3.bf16.msra.mxu0 %v2862_v26 }
0x1000   :  { %2668 = vmatprep.mubr.msk.bf16.mxu0 %vm2959_vm0, %v2958_v0  ;;  %2666 = vmatprep.subr.bf16.mxu0 %v2958_v0 }
0x1002   :  { %2659 = vmatpush3.bf16.msra.mxu1 %v3082_v17 }
0x1003   :  { %2672 = vmatprep.subr.bf16.mxu1 %v2958_v0  ;;  %2667 = vmatpush3.bf16.msra.mxu0 %v2863_v28 }
0x1004   :  { %2680 = vmatprep.subr.bf16.mxu0 %v2958_v0 }
0x10b5   :  { %v1614_v49 = vpop.f32.mrf.mxu1  ;;  %v1679_v47 = vpop.f32.mrf.mxu0 }
0x10b6   :  { %v1620_v50 = vadd.f32 %v1614_v49, %v1570_v1  ;;  %v1680_v56 = vadd.f32 %v3114_v27, %v1679_v47  ;;  %v2865_v1 = vld [vmem:[#allocation6] ss:$0 sm:$0xff] }
0x10b7   :  { %v2633_v51 = vpop.f32.mrf.mxu1  ;;  %v2641_v52 = vpop.f32.mrf.mxu0 }
0x10b8   :  { %2822 = vtanh.f32 %v1620_v50  ;;  %v2369_v62 = vmul.f32 -1.442695, %v1620_v50 }
0x10b9   :  { %v1617_v53 = vpop.f32.mrf.mxu1  ;;  %v1682_v54 = vpop.f32.mrf.mxu0 }
0x10bb   :  { %v2634_v15 = vpop.f32.mrf.mxu1  ;;  %v2642_v55 = vpop.f32.mrf.mxu0 }
0x10bd   :  { %v1726_v57 = vpop.f32.mrf.mxu1 }
0x10be   :  { %v1732_v58 = vadd.f32 %v1726_v57, %v1680_v56 }
0x10bf   :  { %v2649_v59 = vpop.f32.mrf.mxu1 }
0x10c0   :  { %2824 = vtanh.f32 %v1732_v58  ;;  %v2372_v63 = vmul.f32 -1.442695, %v1732_v58 }
0x10c1   :  { %v1729_v17 = vpop.f32.mrf.mxu1  ;;  %2826 = vpow2.f32 %v2369_v62 }
0x10c2   :  { %2828 = vpow2.f32 %v2372_v63 }
0x10c3   :  { %v2650_v60 = vpop.f32.mrf.mxu1 }
0x10c5   :  { %v2823_v61 = vpop.eup %2822 }
0x10c6   :  { %1630 = vrot.lane.b32.xlu0 %v2823_v61, %s2953_s20 }
0x10cd   :  { %v2825_v3 = vpop.eup %2824 }
0x10ce   :  { %1742 = vrot.lane.b32.xlu1 %v2825_v3, %s2953_s20  ;;  %v2827_v2 = vpop.eup %2826 }
0x10cf   :  { %v1624_v4 = vadd.f32 1.0, %v2827_v2  ;;  %v2829_v27 = vpop.eup %2828 }
0x10d0   :  { %v1736_v5 = vadd.f32 1.0, %v2829_v27 }
0x10d1   :  { %2830 = vrcp.f32 %v1624_v4 }
0x10d2   :  { %2832 = vrcp.f32 %v1736_v5 }
0x10de   :  { %v2831_v7 = vpop.eup %2830 }
0x10df   :  { %v2833_v11 = vpop.eup %2832  ;;  %v1628_v14 = vmul.f32 %v2831_v7, %v3316_v33 }
0x10e0   :  { %v1740_v21 = vmul.f32 %v2833_v11, %v3320_v36  ;;  %v1828_v36 = vpop.f32.mrf.mxu0 }
0x10e1   :  { %v1829_v41 = vadd.f32 %v2864_v40, %v1828_v36 }
0x10e2   :  { %v2655_v37 = vpop.f32.mrf.mxu0 }
0x1138   :  { %v1631_v9 = vpop.permute.xlu0 %1630 }
0x1139   :  { %v1633_v10 = vmul.f32 %v2831_v7, %v1631_v9 }
0x113b   :  { %1635 = vrot.lane.b32.xlu0 %v1633_v10, %s2961_s13 }
0x1140   :  { %v1743_v12 = vpop.permute.xlu1 %1742 }
0x1141   :  { %v1745_v13 = vmul.f32 %v2833_v11, %v1743_v12 }
0x1143   :  { %1747 = vrot.lane.b32.xlu1 %v1745_v13, %s2961_s13 }
0x11ad   :  { %v1636_v19 = vpop.permute.xlu0 %1635 }
0x11ae   :  { %v3364_v20 = vadd.f32 %v1636_v19, %v1628_v14 }
0x11b0   :  { %2834 = vtanh.f32 %v3364_v20 }
0x11b5   :  { %v1748_v22 = vpop.permute.xlu1 %1747 }
0x11b6   :  { %v3368_v23 = vadd.f32 %v1748_v22, %v1740_v21 }
0x11b8   :  { %2836 = vtanh.f32 %v3368_v23 }
0x11bd   :  { %v2835_v24 = vpop.eup %2834 }
0x11be   :  { %1641 = vrot.lane.b32.xlu0 %v2835_v24, %s2953_s20 }
0x11c5   :  { %v2837_v29 = vpop.eup %2836 }
0x11c6   :  { %1753 = vrot.lane.b32.xlu1 %v2837_v29, %s2953_s20 }
0x1230   :  { %v1642_v30 = vpop.permute.xlu0 %1641 }
0x1231   :  { %v1644_v31 = vmul.f32 %v2831_v7, %v1642_v30 }
0x1233   :  { %v1832_v32 = vpack.c.bf16 %v1644_v31, %v1644_v31 }
0x1235   :  { %1834 = vrot.lane.b32.xlu0 %v1832_v32, %s2961_s13 }
0x1238   :  { %v1754_v33 = vpop.permute.xlu1 %1753 }
0x1239   :  { %v1756_v34 = vmul.f32 %v2833_v11, %v1754_v33 }
0x123b   :  { %v1944_v35 = vpack.c.bf16 %v1756_v34, %v1756_v34 }
0x123d   :  { %1946 = vrot.lane.b32.xlu1 %v1944_v35, %s2961_s13 }
0x12a7   :  { %v1835_v39 = vpop.permute.xlu0 %1834 }
0x12a8   :  { %2661 = vmatmul.mubr.msk.bf16.vlgmr.msra.gmra.mxu1 %vm297_vm3, %v1835_v39  ;;  %2669 = vmatmul.mubr.msk.bf16.vlgmr.msra.gmra.mxu0 %vm297_vm3, %v1835_v39 }
0x12a9   :  { %2673 = vmatpush3.bf16.msra.mxu1 %v3140_v6  ;;  %2676 = vmatprep.mubr.msk.bf16.mxu1 %vm2959_vm0, %v2958_v0 }
0x12aa   :  { %2674 = vmatprep.subr.bf16.mxu1 %v2958_v0  ;;  %2681 = vmatpush3.bf16.msra.mxu0 %v2862_v26 }
0x12ab   :  { %2682 = vmatprep.subr.bf16.mxu0 %v2958_v0  ;;  %2684 = vmatprep.mubr.msk.bf16.mxu0 %vm2959_vm0, %v2958_v0 }
0x12ad   :  { %2675 = vmatpush3.bf16.msra.mxu1 %v3145_v8 }
0x12ae   :  { %2683 = vmatpush3.bf16.msra.mxu0 %v2863_v28  ;;  %2688 = vmatprep.subr.bf16.mxu1 %v2958_v0 }
0x12af   :  { %v1947_v38 = vpop.permute.xlu1 %1946  ;;  %2696 = vmatprep.subr.mxu0 %v2958_v0 }
0x12b0   :  { %2677 = vmatmul.mubr.msk.bf16.vlgmr.msra.gmra.mxu1 %vm297_vm3, %v1947_v38 }
0x12b1   :  { %2689 = vmatpush3.bf16.msra.mxu1 %v3140_v6  ;;  %2692 = vmatprep.mubr.msk.bf16.mxu1 %vm2959_vm0, %v2958_v0 }
0x12b2   :  { %2690 = vmatprep.subr.bf16.mxu1 %v2958_v0 }
0x12b5   :  { %2691 = vmatpush3.bf16.msra.mxu1 %v3145_v8 }
0x12b6   :  { %2707 = vmatprep.subr.mxu1 %v2958_v0 }
0x1368   :  { %v1873_v42 = vpop.f32.mrf.mxu1  ;;  %v1938_v44 = vpop.f32.mrf.mxu0 }
0x1369   :  { %v1879_v43 = vadd.f32 %v1873_v42, %v1829_v41  ;;  %v1939_v49 = vadd.f32 %v2865_v1, %v1938_v44 }
0x136a   :  { %v2662_v16 = vpop.f32.mrf.mxu1  ;;  %v2670_v45 = vpop.f32.mrf.mxu0 }
0x136b   :  { %2838 = vtanh.f32 %v1879_v43  ;;  %v2377_v15 = vmul.f32 -1.442695, %v1879_v43  ;;  %v2138_v16 = vld [vmem:[%s3476_s7 + $0x18] sm:$0xff]  ;;  %v2137_v45 = vld [vmem:[%s3476_s7 + $0x10] sm:$0xff] }
0x136c   :  { %v1876_v6 = vpop.f32.mrf.mxu1  ;;  %v1941_v46 = vpop.f32.mrf.mxu0 }
0x136d   :  { %v2136_v6 = vld [vmem:[%s3476_s7 + $0x8] sm:$0xff]  ;;  %v2135_v46 = vld [vmem:[%s3476_s7] sm:$0xff] }
0x136e   :  { %v2663_v48 = vpop.f32.mrf.mxu1  ;;  %v2671_v18 = vpop.f32.mrf.mxu0 }
0x136f   :  { %v2225_v18 = vld [vmem:[%s3478_s9 + $0x18] sm:$0xff] }
0x1370   :  { %v1985_v8 = vpop.f32.mrf.mxu1 }
0x1371   :  { %v1991_v47 = vadd.f32 %v1985_v8, %v1939_v49 }
0x1372   :  { %v2678_v50 = vpop.f32.mrf.mxu1 }
0x1373   :  { %2840 = vtanh.f32 %v1991_v47  ;;  %v2380_v55 = vmul.f32 -1.442695, %v1991_v47  ;;  %v2223_v50 = vld [vmem:[%s3478_s9 + $0x8] sm:$0xff] }
0x1374   :  { %v1988_v51 = vpop.f32.mrf.mxu1  ;;  %2842 = vpow2.f32 %v2377_v15 }
0x1375   :  { %2844 = vpow2.f32 %v2380_v55  ;;  %v2222_v51 = vld [vmem:[%s3478_s9] sm:$0xff] }
0x1376   :  { %v2679_v52 = vpop.f32.mrf.mxu1 }
0x1377   :  { %v2384_v52 = vld [vmem:[#allocation7] ss:$0 sm:$0xff] }
0x1378   :  { %v2839_v53 = vpop.eup %2838 }
0x1379   :  { %1889 = vrot.lane.b32.xlu0 %v2839_v53, %s2953_s20 }
0x1380   :  { %v2841_v54 = vpop.eup %2840 }
0x1381   :  { %2001 = vrot.lane.b32.xlu1 %v2841_v54, %s2953_s20  ;;  %v2843_v56 = vpop.eup %2842 }
0x1382   :  { %v1883_v57 = vadd.f32 1.0, %v2843_v56  ;;  %v2845_v58 = vpop.eup %2844  ;;  %v2386_v56 = vld [vmem:[%s3479_s10] ss:$0 sm:$0xff] }
0x1383   :  { %v1995_v59 = vadd.f32 1.0, %v2845_v58 }
0x1384   :  { %2846 = vrcp.f32 %v1883_v57 }
0x1385   :  { %2848 = vrcp.f32 %v1995_v59 }
0x1391   :  { %v2847_v17 = vpop.eup %2846 }
0x1392   :  { %v2849_v3 = vpop.eup %2848  ;;  %v1887_v2 = vmul.f32 %v2847_v17, %v3364_v20 }
0x1393   :  { %v1999_v5 = vmul.f32 %v2849_v3, %v3368_v23 }
0x13eb   :  { %v1890_v60 = vpop.permute.xlu0 %1889 }
0x13ec   :  { %v1892_v61 = vmul.f32 %v2847_v17, %v1890_v60 }
0x13ee   :  { %1894 = vrot.lane.b32.xlu0 %v1892_v61, %s2961_s13 }
0x13f3   :  { %v2002_v62 = vpop.permute.xlu1 %2001 }
0x13f4   :  { %v2004_v63 = vmul.f32 %v2849_v3, %v2002_v62 }
0x13f6   :  { %2006 = vrot.lane.b32.xlu1 %v2004_v63, %s2961_s13 }
0x1460   :  { %v1895_v4 = vpop.permute.xlu0 %1894 }
0x1461   :  { %v1897_v27 = vadd.f32 %v1895_v4, %v1887_v2 }
0x1463   :  { %2850 = vtanh.f32 %v1897_v27 }
0x1468   :  { %v2007_v7 = vpop.permute.xlu1 %2006 }
0x1469   :  { %v2009_v9 = vadd.f32 %v2007_v7, %v1999_v5 }
0x146b   :  { %2852 = vtanh.f32 %v2009_v9 }
0x1470   :  { %v2851_v10 = vpop.eup %2850 }
0x1471   :  { %1900 = vrot.lane.b32.xlu0 %v2851_v10, %s2953_s20 }
0x1478   :  { %v2853_v11 = vpop.eup %2852 }
0x1479   :  { %2012 = vrot.lane.b32.xlu1 %v2853_v11, %s2953_s20 }
0x14e3   :  { %v1901_v12 = vpop.permute.xlu0 %1900 }
0x14e4   :  { %v1903_v13 = vmul.f32 %v2847_v17, %v1901_v12 }
0x14e6   :  { %v2016_v14 = vpack.c.bf16 %v1903_v13, %v1903_v13 }
0x14e8   :  { %2018 = vrot.lane.b32.xlu0 %v2016_v14, %s2961_s13 }
0x14eb   :  { %v2013_v19 = vpop.permute.xlu1 %2012 }
0x14ec   :  { %v2015_v20 = vmul.f32 %v2849_v3, %v2013_v19 }
0x14ee   :  { %v2063_v21 = vpack.c.bf16 %v2015_v20, %v2015_v20 }
0x14f0   :  { %2065 = vrot.lane.b32.xlu1 %v2063_v21, %s2961_s13 }
0x155a   :  { %v2019_v22 = vpop.permute.xlu0 %2018 }
0x155b   :  { %2685 = vmatmul.mubr.msk.bf16.vlgmr.msra.gmra.mxu0 %vm297_vm3, %v2019_v22 }
0x155c   :  { %2704 = vmatprep.mubr.msk.f32.mxu0 %vm2959_vm0, %v2958_v0  ;;  %2697 = vmatpush3.msra.mxu0 %v2138_v16 }
0x155d   :  { %2698 = vmatprep.subr.mxu0 %v2958_v0 }
0x155e   :  { %2699 = vmatpush3.msra.mxu0 %v2137_v45 }
0x155f   :  { %2700 = vmatprep.subr.mxu0 %v2958_v0 }
0x1560   :  { %2701 = vmatpush3.msra.mxu0 %v2136_v6 }
0x1561   :  { %2702 = vmatprep.subr.mxu0 %v2958_v0 }
0x1562   :  { %v2066_v23 = vpop.permute.xlu1 %2065  ;;  %2703 = vmatpush3.msra.mxu0 %v2135_v46 }
0x1563   :  { %2693 = vmatmul.mubr.msk.bf16.vlgmr.msra.gmra.mxu1 %vm297_vm3, %v2066_v23 }
0x1564   :  { %2715 = vmatprep.mubr.msk.f32.mxu1 %vm2959_vm0, %v2958_v0  ;;  %2708 = vmatpush3.msra.mxu1 %v2225_v18 }
0x1565   :  { %2709 = vmatprep.subr.mxu1 %v2958_v0 }
0x161b   :  { %v2057_v24 = vpop.f32.mrf.mxu0 }
0x161c   :  { %v2058_v29 = vadd.f32 %v2865_v1, %v2057_v24  ;;  %v2224_v1 = vld [vmem:[%s3478_s9 + $0x10] sm:$0xff] }
0x161d   :  { %v2686_v25 = vpop.f32.mrf.mxu0  ;;  %2710 = vmatpush3.msra.mxu1 %v2224_v1 }
0x161e   :  { %2711 = vmatprep.subr.mxu1 %v2958_v0 }
0x161f   :  { %v2060_v26 = vpop.f32.mrf.mxu0  ;;  %2712 = vmatpush3.msra.mxu1 %v2223_v50 }
0x1620   :  { %2713 = vmatprep.subr.mxu1 %v2958_v0 }
0x1621   :  { %v2687_v28 = vpop.f32.mrf.mxu0  ;;  %2714 = vmatpush3.msra.mxu1 %v2222_v51 }
0x1623   :  { %v2104_v30 = vpop.f32.mrf.mxu1 }
0x1624   :  { %v2110_v31 = vadd.f32 %v2104_v30, %v2058_v29 }
0x1625   :  { %v2694_v32 = vpop.f32.mrf.mxu1 }
0x1626   :  { %2854 = vtanh.f32 %v2110_v31  ;;  %v2383_v36 = vmul.f32 -1.442695, %v2110_v31 }
0x1627   :  { %v2107_v33 = vpop.f32.mrf.mxu1 }
0x1628   :  { %2856 = vpow2.f32 %v2383_v36 }
0x1629   :  { %v2695_v34 = vpop.f32.mrf.mxu1 }
0x1633   :  { %v2855_v35 = vpop.eup %2854 }
0x1634   :  { %2120 = vrot.lane.b32.xlu0 %v2855_v35, %s2953_s20 }
0x1635   :  { %v2857_v37 = vpop.eup %2856 }
0x1636   :  { %v2114_v39 = vadd.f32 1.0, %v2857_v37 }
0x1638   :  { %2858 = vrcp.f32 %v2114_v39 }
0x1645   :  { %v2859_v38 = vpop.eup %2858 }
0x1646   :  { %v2118_v42 = vmul.f32 %v2859_v38, %v2009_v9 }
0x16a6   :  { %v2121_v40 = vpop.permute.xlu0 %2120 }
0x16a7   :  { %v2123_v41 = vmul.f32 %v2859_v38, %v2121_v40 }
0x16a9   :  { %2125 = vrot.lane.b32.xlu1 %v2123_v41, %s2961_s13 }
0x171b   :  { %v2126_v44 = vpop.permute.xlu1 %2125 }
0x171c   :  { %v2128_v43 = vadd.f32 %v2126_v44, %v2118_v42 }
0x171e   :  { %2860 = vtanh.f32 %v2128_v43 }
0x172b   :  { %v2861_v48 = vpop.eup %2860 }
0x172c   :  { %2131 = vrot.lane.b32.xlu0 %v2861_v48, %s2953_s20 }
0x179e   :  { %v2132_v49 = vpop.permute.xlu0 %2131 }
0x179f   :  { %v2134_v8 = vmul.f32 %v2859_v38, %v2132_v49 }
0x17a1   :  { %2147 = vrot.lane.b32.xlu1 %v2134_v8, %s2961_s13 }
0x1813   :  { %v2148_v47 = vpop.permute.xlu1 %2147 }
0x1814   :  { %2705 = vmatmul.mubr.msk.f32.vlgmr.msra.gmra.mxu0 %vm297_vm3, %v2148_v47 }
0x18d4   :  { %v2217_v53 = vpop.f32.mrf.mxu0 }
0x18d5   :  { %v2218_v54 = vadd.f32 %v2384_v52, %v2217_v53 }
0x18d6   :  { %v2706_v15 = vpop.f32.mrf.mxu0 }
0x18d7   :  { %v2221_v55 = vmax.f32 %v2218_v54, 0.0 }
0x18d9   :  { %2716 = vmatmul.mubr.msk.f32.vlgmr.msra.gmra.mxu1 %vm297_vm3, %v2221_v55 }
0x1999   :  { %v2302_v57 = vpop.f32.mrf.mxu1 }
0x199a   :  { %v2303_v58 = vadd.f32 %v2386_v56, %v2302_v57 }
0x199b   :  { %v2717_v59 = vpop.f32.mrf.mxu1 }
0x199c   :  { %2307 = vst.msk [vmem:[%s3480_s11] sm:$0x3] %vm2306_vm4, %v2303_v58 }
0x199d   :  { %2312 = vsyncpa [#allocation3], 1 }
0x199e   :  { %2313 = vsyncpa [#allocation5], 1 }
0x199f   :  { %2314 = vsyncpa [#allocation8], 1 }

</bundles_post_ra>
